<compile_context>
chip_gen: v5e
topology: v5e:2x2
jax: 0.10.0
libtpu: 0.0.40
codegen_flags: <defaults>
</compile_context>

<pallas_src>
import jax
import jax.numpy as jnp
import numpy as np
from jax.experimental import pallas as pl
from jax.experimental.pallas import tpu as pltpu

# ----------------------------- model config ---------------------------------
C = 4             # num_channels (== num_output_channels)
S = 3             # num_neighbors (spatial window, conv kernel size == S)
CONV = 16         # encoder_conv_layers = y_conv_layers = [16], kernel 3
FC1, FC2 = 32, 16 # encoder_fc_layers = y_fc_layers = pz_fc_layers = [32, 16]
K = 10            # number of GMM components
L = 8             # latent_dim  (encoder emits 2*L = mean | logvar)
DEC1, DEC2 = 16, 32  # decoder_fc_layers
OUT_C = C
L2 = 2 * L

XDIM = C * S * S          # 36 flattened conv patch
XPAD = 40                 # XDIM padded to a multiple of 8
XIN_COLS = XPAD + L       # 48 packed input cols: [x(36) | 0(4) | eps(8)]
LANES = 32                # every slab / activation is 32 lanes wide

TB = 16                   # batch tile per grid step (one tile per TensorCore)
KB_T = K * TB             # 160 one-hot rows per tile
NROWS_T = KB_T + TB       # 176 rows through the batched qz tail per tile
OUT_TILE = NROWS_T + 2 * TB  # 208 packed output rows per tile: [zall | dec | y]

# --------- static row layout of the single packed parameter slab -------------
WX = slice(0, 40)               # (40,32) [y-conv | qz-conv x-part], rows 36:40 zero
WYF1 = slice(40, 72)            # (32,32) y fc1,  rows 16:32 zero (kills qz lanes)
WYF2 = slice(72, 104)           # (32,32) y fc2,  cols 16:32 zero
WYO = slice(104, 136)           # (32,32) y out,  cols K:32 zero
WQZY = slice(136, 168)          # (32,32) qz-conv y-part, rows 0:K -> cols 16:32
WQF1 = slice(168, 200)          # (32,32) qz fc1, rows 0:16 zero (kills y lanes)
WQF2 = slice(200, 232)          # (32,32) qz fc2, cols 16:32 zero
WQO = slice(232, 264)           # (32,32) qz out, cols 16:32 zero
WD1 = slice(264, 272)           # (8,32)  dec fc1, cols 16:32 zero
WD2 = slice(272, 304)           # (32,32) dec fc2, rows 16:32 zero
WDO = slice(304, 336)           # (32,32) dec out, cols OUT_C:32 zero
BIAS = slice(336, 352)          # (16,32) one bias row per layer
SEL = slice(352, 352 + NROWS_T)               # (176,32) row-selection matrix
ADD = slice(352 + NROWS_T, 352 + 2 * NROWS_T)  # (176,32) one-hot wqzy additive term
SLAB_ROWS = 352 + 2 * NROWS_T   # 704


# ------------------------------- kernel -------------------------------------
def gmmvae_kernel(xin_ref, w_ref, out_ref, xy_ref):
    relu = lambda v: jnp.maximum(v, 0.0)
    dot = lambda a, b: jnp.dot(a, b, preferred_element_type=jnp.float32)

    xe = xin_ref[...]                       # (TB, 48): [x(36) | 0(4) | eps(8)]
    x = xe[:, :XPAD]                        # (TB, 40), cols 36:40 zero
    eps = xe[:, XPAD:XPAD + L]              # (TB, 8)
    bias = w_ref[BIAS, :]                   # (16, 32)

    # fused x-facing conv-as-matmul: lanes 0:16 = y-conv out, 16:32 = qz x-part
    xh = dot(x, w_ref[WX, :]) + bias[0:1, :]                       # (TB, 32)

    # ---- y encoder -> latent_y = softmax(logits) -----------------------------
    # relu the full 32 lanes; zero-padded WYF1 rows kill the qz lanes (no slice)
    hy = relu(dot(relu(xh), w_ref[WYF1, :]) + bias[1:2, :])        # (TB, 32)
    hy = relu(dot(hy, w_ref[WYF2, :]) + bias[2:3, :])              # (TB, 32)
    logits = dot(hy, w_ref[WYO, :]) + bias[3:4, :]                 # pad lanes -1e30
    logits = logits - jnp.max(logits, axis=-1, keepdims=True)
    e = jnp.exp(logits)                                            # pad lanes -> 0
    y32 = e / jnp.sum(e, axis=-1, keepdims=True)                   # (TB, 32)

    # ---- batched qz: [one_hot(0..K-1) x TB | actual-y x TB] in one tail pass --
    yq32 = dot(y32, w_ref[WQZY, :])                                # (TB, 32), lanes 0:16 = 0
    xy_ref[0:TB, :] = xh                                           # aligned scratch stores
    xy_ref[TB:2 * TB, :] = yq32
    h1 = relu(dot(w_ref[SEL, :], xy_ref[...]) + w_ref[ADD, :])     # (176, 32)
    h2 = relu(dot(h1, w_ref[WQF1, :]) + bias[4:5, :])              # (176, 32)
    h3 = relu(dot(h2, w_ref[WQF2, :]) + bias[5:6, :])              # (176, 32)
    zall = dot(h3, w_ref[WQO, :]) + bias[6:7, :]                   # (176, 32) [mean|logvar|0]

    # ---- reparameterize + decode the actual-y rows (last TB rows of zall) ----
    zlat = zall[KB_T:, :]                                          # (TB, 32)
    z = eps * jnp.exp(0.5 * zlat[:, L:2 * L]) + zlat[:, :L]        # (TB, L)
    d = relu(dot(z, w_ref[WD1, :]) + bias[7:8, :])                 # (TB, 32)
    d = relu(dot(d, w_ref[WD2, :]) + bias[8:9, :])                 # (TB, 32)
    dec = dot(d, w_ref[WDO, :]) + bias[9:10, :]                    # (TB, 32), lanes 0:4 data

    # ---- single packed output slab (3 aligned stores) -------------------------
    out_ref[0:NROWS_T, :] = zall
    out_ref[NROWS_T:NROWS_T + TB, :] = dec
    out_ref[NROWS_T + TB:, :] = y32


# --------------------------- params (deterministic) --------------------------
def _init_linear(key, out_f, in_f):
    k1, k2 = jax.random.split(key)
    w = jax.random.normal(k1, (out_f, in_f), jnp.float32) / np.sqrt(in_f)
    b = jax.random.normal(k2, (out_f,), jnp.float32) * 0.01
    return w, b


def _init_conv(key, out_c, in_c, ks):
    k1, k2 = jax.random.split(key)
    w = jax.random.normal(k1, (out_c, in_c, ks, ks), jnp.float32) / np.sqrt(in_c * ks * ks)
    b = jax.random.normal(k2, (out_c,), jnp.float32) * 0.01
    return w, b


def init_params(key):
    ks = jax.random.split(key, 14)
    p = {}
    p['y_conv_w'], p['y_conv_b'] = _init_conv(ks[0], CONV, C, S)
    p['y_fc1_w'], p['y_fc1_b'] = _init_linear(ks[1], FC1, CONV)
    p['y_fc2_w'], p['y_fc2_b'] = _init_linear(ks[2], FC2, FC1)
    p['y_out_w'], p['y_out_b'] = _init_linear(ks[3], K, FC2)
    p['qz_conv_w'], p['qz_conv_b'] = _init_conv(ks[4], CONV, C + K, S)
    p['qz_fc1_w'], p['qz_fc1_b'] = _init_linear(ks[5], FC1, CONV)
    p['qz_fc2_w'], p['qz_fc2_b'] = _init_linear(ks[6], FC2, FC1)
    p['qz_out_w'], p['qz_out_b'] = _init_linear(ks[7], L2, FC2)
    p['pz_fc1_w'], p['pz_fc1_b'] = _init_linear(ks[8], FC1, K)
    p['pz_fc2_w'], p['pz_fc2_b'] = _init_linear(ks[9], FC2, FC1)
    p['pz_out_w'], p['pz_out_b'] = _init_linear(ks[10], L2, FC2)
    p['dec_fc1_w'], p['dec_fc1_b'] = _init_linear(ks[11], DEC1, L)
    p['dec_fc2_w'], p['dec_fc2_b'] = _init_linear(ks[12], DEC2, DEC1)
    p['dec_out_w'], p['dec_out_b'] = _init_linear(ks[13], OUT_C, DEC2)
    return p


# ----------------------- one-time parameter preparation ----------------------
def prepare_params(p):
    """Host-side, ONCE per parameter set: pack torch-layout weights into a single
    lane-dense (704,32) slab (weights, biases, selection matrix, one-hot wqzy
    additive term) and precompute the parameter-only pZ prior table."""
    f = np.float32
    T = lambda w: np.asarray(w, f).T
    A = lambda w: np.asarray(w, f)

    wyc = T(A(p['y_conv_w']).reshape(CONV, XDIM))          # (36, 16)
    qzw = A(p['qz_conv_w'])
    wqzx = T(qzw[:, :C].reshape(CONV, XDIM))               # (36, 16)
    wqzy = T(qzw[:, C:].sum(axis=(2, 3)))                  # (K, 16) summed over h,w

    slab = np.zeros((SLAB_ROWS, LANES), f)

    slab[WX][:XDIM, :CONV] = wyc
    slab[WX][:XDIM, CONV:] = wqzx
    slab[WYF1][:CONV, :] = T(p['y_fc1_w'])                 # (16, 32)
    slab[WYF2][:, :FC2] = T(p['y_fc2_w'])                  # (32, 16)
    slab[WYO][:FC2, :K] = T(p['y_out_w'])                  # (16, 10)
    slab[WQZY][:K, CONV:] = wqzy                           # (10, 16) -> lanes 16:32
    slab[WQF1][CONV:, :] = T(p['qz_fc1_w'])                # rows 16:32
    slab[WQF2][:, :FC2] = T(p['qz_fc2_w'])                 # (32, 16)
    slab[WQO][:FC2, :L2] = T(p['qz_out_w'])                # (16, 16)
    slab[WD1][:, :DEC1] = T(p['dec_fc1_w'])                # (8, 16)
    slab[WD2][:DEC1, :] = T(p['dec_fc2_w'])                # (16, 32)
    slab[WDO][:, :OUT_C] = T(p['dec_out_w'])               # (32, 4)

    b = slab[BIAS]
    b[0, :CONV] = A(p['y_conv_b']); b[0, CONV:] = A(p['qz_conv_b'])
    b[1, :FC1] = A(p['y_fc1_b'])
    b[2, :FC2] = A(p['y_fc2_b'])
    b[3, :K] = A(p['y_out_b']); b[3, K:] = -1e30   # padded softmax lanes -> exp -> 0
    b[4, :FC1] = A(p['qz_fc1_b'])
    b[5, :FC2] = A(p['qz_fc2_b'])
    b[6, :L2] = A(p['qz_out_b'])
    b[7, :DEC1] = A(p['dec_fc1_b'])
    b[8, :DEC2] = A(p['dec_fc2_b'])
    b[9, :OUT_C] = A(p['dec_out_b'])

    # selection matrix: qz-tail row r = xh[b] (+ yq[b] for the actual-y rows).
    # scratch layout in-kernel: rows 0:TB = xh, TB:2TB = yq32.
    sel = slab[SEL]
    for i in range(K):
        for bb in range(TB):
            sel[i * TB + bb, bb] = 1.0              # + xh[bb]
    for bb in range(TB):
        sel[KB_T + bb, bb] = 1.0                    # + xh[bb]
        sel[KB_T + bb, TB + bb] = 1.0               # + yq32[bb]  (actual latent_y)

    # one-hot wqzy contribution folded host-side into an additive constant
    add = slab[ADD]
    for i in range(K):
        add[i * TB:(i + 1) * TB, CONV:] = wqzy[i]

    # parameter-only pZ prior for all K one-hot classes (eye(K) @ W.T == W.T)
    relu = lambda v: np.maximum(v, 0.0)
    ph = relu(T(p['pz_fc1_w']) + A(p['pz_fc1_b']))         # (K, FC1)
    ph = relu(ph @ T(p['pz_fc2_w']) + A(p['pz_fc2_b']))    # (K, FC2)
    pzk = ph @ T(p['pz_out_w']) + A(p['pz_out_b'])         # (K, L2)

    return dict(slab=jnp.asarray(slab), pzk=jnp.asarray(pzk))


# ------------------------------ wrapper --------------------------------------
def gmmvae_forward(x, eps, prepped):
    """Returns (decoder_output, latent_y, latent_zy) like the GMMVAE model_output."""
    b = x.shape[0]
    assert b % TB == 0, "batch must be a multiple of the tile size TB"
    nt = b // TB
    x_flat = x.reshape(b, XDIM).astype(jnp.float32)
    xin = jnp.concatenate(
        [x_flat, jnp.zeros((b, XPAD - XDIM), jnp.float32), eps.astype(jnp.float32)],
        axis=1)                                                    # (B, 48)

    flops = 2 * nt * (TB * XPAD * LANES + 8 * TB * LANES * LANES
                      + 4 * NROWS_T * LANES * LANES + TB * L * LANES)
    ce = pl.CostEstimate(
        flops=flops,
        transcendentals=nt * (TB * LANES + TB * L),
        bytes_accessed=xin.size * 4 + SLAB_ROWS * LANES * 4 + nt * OUT_TILE * LANES * 4)

    out = pl.pallas_call(
        gmmvae_kernel,
        out_shape=jax.ShapeDtypeStruct((nt * OUT_TILE, LANES), jnp.float32),
        grid_spec=pltpu.PrefetchScalarGridSpec(
            num_scalar_prefetch=0,
            grid=(nt,),
            in_specs=[pl.BlockSpec((TB, XIN_COLS), lambda i: (i, 0)),
                      pl.BlockSpec((SLAB_ROWS, LANES), lambda i: (0, 0))],
            out_specs=pl.BlockSpec((OUT_TILE, LANES), lambda i: (i, 0)),
            scratch_shapes=[pltpu.VMEM((2 * TB, LANES), jnp.float32)]),
        compiler_params=pltpu.CompilerParams(dimension_semantics=("parallel",)),
        cost_estimate=ce,
    )(xin, prepped['slab'])

    # glue: unpack the packed output slab(s)
    out = out.reshape(nt, OUT_TILE, LANES)
    qZ = out[:, :KB_T, :L2].reshape(nt, K, TB, L2).transpose(0, 2, 1, 3).reshape(b, K, L2)
    dec = out[:, NROWS_T:NROWS_T + TB, :OUT_C].reshape(b, OUT_C)
    y = out[:, NROWS_T + TB:, :K].reshape(b, K)

    # latent_zy = stack([pZ, qZ, qY], dim=1) -> (B, 3, K, 2L)
    pZ = jnp.broadcast_to(prepped['pzk'][None], (b, K, L2))
    qY = jnp.broadcast_to(y[:, :, None], (b, K, L2))
    latent_zy = jnp.stack([pZ, qZ, qY], axis=1)
    return dec, y, latent_zy


# ---------------------------- pure-JAX reference -----------------------------
def ref_forward(x, eps, p):
    b = x.shape[0]
    relu = lambda v: jnp.maximum(v, 0.0)
    lin = lambda h, w, bb: h @ w.T + bb
    conv_full = lambda inp, w, bb: jnp.einsum('bchw,ochw->bo', inp, w) + bb

    h = relu(conv_full(x, p['y_conv_w'], p['y_conv_b']))
    h = relu(lin(h, p['y_fc1_w'], p['y_fc1_b']))
    h = relu(lin(h, p['y_fc2_w'], p['y_fc2_b']))
    y = jax.nn.softmax(lin(h, p['y_out_w'], p['y_out_b']), axis=-1)

    def qz(ycls):
        yb = jnp.broadcast_to(ycls[:, :, None, None], (b, K, S, S))
        xi = jnp.concatenate([x, yb], axis=1)
        hh = relu(conv_full(xi, p['qz_conv_w'], p['qz_conv_b']))
        hh = relu(lin(hh, p['qz_fc1_w'], p['qz_fc1_b']))
        hh = relu(lin(hh, p['qz_fc2_w'], p['qz_fc2_b']))
        return lin(hh, p['qz_out_w'], p['qz_out_b'])

    def pz(ycls):
        hh = relu(lin(ycls, p['pz_fc1_w'], p['pz_fc1_b']))
        hh = relu(lin(hh, p['pz_fc2_w'], p['pz_fc2_b']))
        return lin(hh, p['pz_out_w'], p['pz_out_b'])

    Z = qz(y)
    z = eps * jnp.exp(0.5 * Z[:, L:]) + Z[:, :L]
    d = relu(lin(z, p['dec_fc1_w'], p['dec_fc1_b']))
    d = relu(lin(d, p['dec_fc2_w'], p['dec_fc2_b']))
    dec = lin(d, p['dec_out_w'], p['dec_out_b'])

    pZ, qZ = [], []
    for i in range(K):
        onehot = jnp.zeros((b, K), jnp.float32).at[:, i].set(1.0)
        pZ.append(pz(onehot))
        qZ.append(qz(onehot))
    pZ = jnp.stack(pZ, axis=1)
    qZ = jnp.stack(qZ, axis=1)
    qY = jnp.broadcast_to(y[:, :, None], (b, K, L2))
    latent_zy = jnp.stack([pZ, qZ, qY], axis=1)
    return dec, y, latent_zy


# --------------------------------- main ---------------------------------------
if __name__ == "__main__":
    B = 32  # 2 batch tiles of TB=16 -> 2-point "parallel" grid (both v7x TCs)
    key = jax.random.PRNGKey(0)
    kx, keps, kp = jax.random.split(key, 3)
    x = jax.random.normal(kx, (B, C, S, S), jnp.float32)
    eps = jax.random.normal(keps, (B, L), jnp.float32)
    params = init_params(kp)

    prepped = prepare_params(params)        # cached once per parameter set
    dec, y, zy = gmmvae_forward(x, eps, prepped)
    jax.block_until_ready((dec, y, zy))

    dec_r, y_r, zy_r = ref_forward(x, eps, params)
    assert dec.shape == (B, OUT_C) and y.shape == (B, K) and zy.shape == (B, 3, K, L2)
    assert np.allclose(np.asarray(dec), np.asarray(dec_r), rtol=1e-4, atol=1e-4)
    assert np.allclose(np.asarray(y), np.asarray(y_r), rtol=1e-4, atol=1e-4)
    assert np.allclose(np.asarray(zy), np.asarray(zy_r), rtol=1e-4, atol=1e-4)
    print("KERNEL_OK")
</pallas_src>

<mosaic_0001>
module attributes {stable_mosaic.version = 11 : i64} {
  func.func @gmmvae_kernel(%arg0: i32, %arg1: memref<16x48xf32, #tpu.memory_space<vmem>>, %arg2: memref<704x32xf32, #tpu.memory_space<vmem>>, %arg3: memref<208x32xf32, #tpu.memory_space<vmem>>, %arg4: memref<32x32xf32, #tpu.memory_space<vmem>>) attributes {dimension_semantics = [#tpu.dimension_semantics<parallel>], iteration_bounds = array<i64: 2>, scalar_prefetch = 0 : i64, scratch_operands = 1 : i64, tpu.core_type = #tpu.core_type<tc>, window_params = [{transform_indices = @transform_0, window_bounds = array<i64: 16, 48>}, {pipeline_mode = #tpu.pipeline_mode<synchronous>, transform_indices = @transform_1, window_bounds = array<i64: 704, 32>}, {transform_indices = @transform_2, window_bounds = array<i64: 208, 32>}]} {
    %c0 = arith.constant 0 : index
    %c0_0 = arith.constant 0 : index
    %0 = vector.load %arg1[%c0, %c0_0] : memref<16x48xf32, #tpu.memory_space<vmem>>, vector<16x48xf32>
    %1 = vector.extract_strided_slice %0 {offsets = [0, 0], sizes = [16, 40], strides = [1, 1]} : vector<16x48xf32> to vector<16x40xf32>
    %2 = vector.extract_strided_slice %0 {offsets = [0, 40], sizes = [16, 8], strides = [1, 1]} : vector<16x48xf32> to vector<16x8xf32>
    %c336 = arith.constant 336 : index
    %c0_1 = arith.constant 0 : index
    %3 = vector.load %arg2[%c336, %c0_1] : memref<704x32xf32, #tpu.memory_space<vmem>>, vector<16x32xf32>
    %c0_2 = arith.constant 0 : index
    %c0_3 = arith.constant 0 : index
    %4 = vector.load %arg2[%c0_2, %c0_3] : memref<704x32xf32, #tpu.memory_space<vmem>>, vector<40x32xf32>
    %cst = arith.constant dense<0.000000e+00> : vector<16x32xf32>
    %5 = tpu.matmul %1, %4, %cst {dimension_numbers = #tpu.dot_dimension_numbers<[1], [0], [0], [1], [0, 0, 1, 1], [], []>} : vector<16x40xf32>, vector<40x32xf32>, vector<16x32xf32> -> vector<16x32xf32>
    %6 = vector.extract_strided_slice %3 {offsets = [0, 0], sizes = [1, 32], strides = [1, 1]} : vector<16x32xf32> to vector<1x32xf32>
    %7 = vector.broadcast %6 : vector<1x32xf32> to vector<16x32xf32>
    %8 = arith.addf %5, %7 : vector<16x32xf32>
    %cst_4 = arith.constant 0.000000e+00 : f32
    %9 = vector.broadcast %cst_4 : f32 to vector<16x32xf32>
    %10 = arith.maximumf %8, %9 : vector<16x32xf32>
    %c40 = arith.constant 40 : index
    %c0_5 = arith.constant 0 : index
    %11 = vector.load %arg2[%c40, %c0_5] : memref<704x32xf32, #tpu.memory_space<vmem>>, vector<32x32xf32>
    %cst_6 = arith.constant dense<0.000000e+00> : vector<16x32xf32>
    %12 = tpu.matmul %10, %11, %cst_6 {dimension_numbers = #tpu.dot_dimension_numbers<[1], [0], [0], [1], [0, 0, 1, 1], [], []>} : vector<16x32xf32>, vector<32x32xf32>, vector<16x32xf32> -> vector<16x32xf32>
    %13 = vector.extract_strided_slice %3 {offsets = [1, 0], sizes = [1, 32], strides = [1, 1]} : vector<16x32xf32> to vector<1x32xf32>
    %14 = vector.broadcast %13 : vector<1x32xf32> to vector<16x32xf32>
    %15 = arith.addf %12, %14 : vector<16x32xf32>
    %cst_7 = arith.constant 0.000000e+00 : f32
    %16 = vector.broadcast %cst_7 : f32 to vector<16x32xf32>
    %17 = arith.maximumf %15, %16 : vector<16x32xf32>
    %c72 = arith.constant 72 : index
    %c0_8 = arith.constant 0 : index
    %18 = vector.load %arg2[%c72, %c0_8] : memref<704x32xf32, #tpu.memory_space<vmem>>, vector<32x32xf32>
    %cst_9 = arith.constant dense<0.000000e+00> : vector<16x32xf32>
    %19 = tpu.matmul %17, %18, %cst_9 {dimension_numbers = #tpu.dot_dimension_numbers<[1], [0], [0], [1], [0, 0, 1, 1], [], []>} : vector<16x32xf32>, vector<32x32xf32>, vector<16x32xf32> -> vector<16x32xf32>
    %20 = vector.extract_strided_slice %3 {offsets = [2, 0], sizes = [1, 32], strides = [1, 1]} : vector<16x32xf32> to vector<1x32xf32>
    %21 = vector.broadcast %20 : vector<1x32xf32> to vector<16x32xf32>
    %22 = arith.addf %19, %21 : vector<16x32xf32>
    %cst_10 = arith.constant 0.000000e+00 : f32
    %23 = vector.broadcast %cst_10 : f32 to vector<16x32xf32>
    %24 = arith.maximumf %22, %23 : vector<16x32xf32>
    %c104 = arith.constant 104 : index
    %c0_11 = arith.constant 0 : index
    %25 = vector.load %arg2[%c104, %c0_11] : memref<704x32xf32, #tpu.memory_space<vmem>>, vector<32x32xf32>
    %cst_12 = arith.constant dense<0.000000e+00> : vector<16x32xf32>
    %26 = tpu.matmul %24, %25, %cst_12 {dimension_numbers = #tpu.dot_dimension_numbers<[1], [0], [0], [1], [0, 0, 1, 1], [], []>} : vector<16x32xf32>, vector<32x32xf32>, vector<16x32xf32> -> vector<16x32xf32>
    %27 = vector.extract_strided_slice %3 {offsets = [3, 0], sizes = [1, 32], strides = [1, 1]} : vector<16x32xf32> to vector<1x32xf32>
    %28 = vector.broadcast %27 : vector<1x32xf32> to vector<16x32xf32>
    %29 = arith.addf %26, %28 : vector<16x32xf32>
    %cst_13 = arith.constant dense<0xFF800000> : vector<16xf32>
    %30 = vector.multi_reduction <maximumf>, %29, %cst_13 [1] : vector<16x32xf32> to vector<16xf32>
    %31 = vector.shape_cast %30 : vector<16xf32> to vector<16x1xf32>
    %32 = vector.broadcast %31 : vector<16x1xf32> to vector<16x32xf32>
    %33 = arith.subf %29, %32 : vector<16x32xf32>
    %34 = math.exp %33 : vector<16x32xf32>
    %cst_14 = arith.constant dense<0.000000e+00> : vector<16xf32>
    %35 = vector.multi_reduction <add>, %34, %cst_14 [1] : vector<16x32xf32> to vector<16xf32>
    %36 = vector.shape_cast %35 : vector<16xf32> to vector<16x1xf32>
    %37 = vector.broadcast %36 : vector<16x1xf32> to vector<16x32xf32>
    %38 = arith.divf %34, %37 : vector<16x32xf32>
    %c136 = arith.constant 136 : index
    %c0_15 = arith.constant 0 : index
    %39 = vector.load %arg2[%c136, %c0_15] : memref<704x32xf32, #tpu.memory_space<vmem>>, vector<32x32xf32>
    %cst_16 = arith.constant dense<0.000000e+00> : vector<16x32xf32>
    %40 = tpu.matmul %38, %39, %cst_16 {dimension_numbers = #tpu.dot_dimension_numbers<[1], [0], [0], [1], [0, 0, 1, 1], [], []>} : vector<16x32xf32>, vector<32x32xf32>, vector<16x32xf32> -> vector<16x32xf32>
    %c0_17 = arith.constant 0 : index
    %c0_18 = arith.constant 0 : index
    %41 = vector.load %arg4[%c0_17, %c0_18] : memref<32x32xf32, #tpu.memory_space<vmem>>, vector<16x32xf32>
    tpu.vector_store %arg4[%c0_17, %c0_18], %8 {strides = array<i32>} : memref<32x32xf32, #tpu.memory_space<vmem>>, vector<16x32xf32>,
    %c16 = arith.constant 16 : index
    %c0_19 = arith.constant 0 : index
    %42 = vector.load %arg4[%c16, %c0_19] : memref<32x32xf32, #tpu.memory_space<vmem>>, vector<16x32xf32>
    tpu.vector_store %arg4[%c16, %c0_19], %40 {strides = array<i32>} : memref<32x32xf32, #tpu.memory_space<vmem>>, vector<16x32xf32>,
    %c352 = arith.constant 352 : index
    %c0_20 = arith.constant 0 : index
    %43 = vector.load %arg2[%c352, %c0_20] : memref<704x32xf32, #tpu.memory_space<vmem>>, vector<176x32xf32>
    %c0_21 = arith.constant 0 : index
    %c0_22 = arith.constant 0 : index
    %44 = vector.load %arg4[%c0_21, %c0_22] : memref<32x32xf32, #tpu.memory_space<vmem>>, vector<32x32xf32>
    %cst_23 = arith.constant dense<0.000000e+00> : vector<176x32xf32>
    %45 = tpu.matmul %43, %44, %cst_23 {dimension_numbers = #tpu.dot_dimension_numbers<[1], [0], [0], [1], [0, 0, 1, 1], [], []>} : vector<176x32xf32>, vector<32x32xf32>, vector<176x32xf32> -> vector<176x32xf32>
    %c528 = arith.constant 528 : index
    %c0_24 = arith.constant 0 : index
    %46 = vector.load %arg2[%c528, %c0_24] : memref<704x32xf32, #tpu.memory_space<vmem>>, vector<176x32xf32>
    %47 = arith.addf %45, %46 : vector<176x32xf32>
    %cst_25 = arith.constant 0.000000e+00 : f32
    %48 = vector.broadcast %cst_25 : f32 to vector<176x32xf32>
    %49 = arith.maximumf %47, %48 : vector<176x32xf32>
    %c168 = arith.constant 168 : index
    %c0_26 = arith.constant 0 : index
    %50 = vector.load %arg2[%c168, %c0_26] : memref<704x32xf32, #tpu.memory_space<vmem>>, vector<32x32xf32>
    %cst_27 = arith.constant dense<0.000000e+00> : vector<176x32xf32>
    %51 = tpu.matmul %49, %50, %cst_27 {dimension_numbers = #tpu.dot_dimension_numbers<[1], [0], [0], [1], [0, 0, 1, 1], [], []>} : vector<176x32xf32>, vector<32x32xf32>, vector<176x32xf32> -> vector<176x32xf32>
    %52 = vector.extract_strided_slice %3 {offsets = [4, 0], sizes = [1, 32], strides = [1, 1]} : vector<16x32xf32> to vector<1x32xf32>
    %53 = vector.broadcast %52 : vector<1x32xf32> to vector<176x32xf32>
    %54 = arith.addf %51, %53 : vector<176x32xf32>
    %cst_28 = arith.constant 0.000000e+00 : f32
    %55 = vector.broadcast %cst_28 : f32 to vector<176x32xf32>
    %56 = arith.maximumf %54, %55 : vector<176x32xf32>
    %c200 = arith.constant 200 : index
    %c0_29 = arith.constant 0 : index
    %57 = vector.load %arg2[%c200, %c0_29] : memref<704x32xf32, #tpu.memory_space<vmem>>, vector<32x32xf32>
    %cst_30 = arith.constant dense<0.000000e+00> : vector<176x32xf32>
    %58 = tpu.matmul %56, %57, %cst_30 {dimension_numbers = #tpu.dot_dimension_numbers<[1], [0], [0], [1], [0, 0, 1, 1], [], []>} : vector<176x32xf32>, vector<32x32xf32>, vector<176x32xf32> -> vector<176x32xf32>
    %59 = vector.extract_strided_slice %3 {offsets = [5, 0], sizes = [1, 32], strides = [1, 1]} : vector<16x32xf32> to vector<1x32xf32>
    %60 = vector.broadcast %59 : vector<1x32xf32> to vector<176x32xf32>
    %61 = arith.addf %58, %60 : vector<176x32xf32>
    %cst_31 = arith.constant 0.000000e+00 : f32
    %62 = vector.broadcast %cst_31 : f32 to vector<176x32xf32>
    %63 = arith.maximumf %61, %62 : vector<176x32xf32>
    %c232 = arith.constant 232 : index
    %c0_32 = arith.constant 0 : index
    %64 = vector.load %arg2[%c232, %c0_32] : memref<704x32xf32, #tpu.memory_space<vmem>>, vector<32x32xf32>
    %cst_33 = arith.constant dense<0.000000e+00> : vector<176x32xf32>
    %65 = tpu.matmul %63, %64, %cst_33 {dimension_numbers = #tpu.dot_dimension_numbers<[1], [0], [0], [1], [0, 0, 1, 1], [], []>} : vector<176x32xf32>, vector<32x32xf32>, vector<176x32xf32> -> vector<176x32xf32>
    %66 = vector.extract_strided_slice %3 {offsets = [6, 0], sizes = [1, 32], strides = [1, 1]} : vector<16x32xf32> to vector<1x32xf32>
    %67 = vector.broadcast %66 : vector<1x32xf32> to vector<176x32xf32>
    %68 = arith.addf %65, %67 : vector<176x32xf32>
    %69 = vector.extract_strided_slice %68 {offsets = [160, 0], sizes = [16, 32], strides = [1, 1]} : vector<176x32xf32> to vector<16x32xf32>
    %70 = vector.extract_strided_slice %69 {offsets = [0, 8], sizes = [16, 8], strides = [1, 1]} : vector<16x32xf32> to vector<16x8xf32>
    %cst_34 = arith.constant 5.000000e-01 : f32
    %71 = vector.broadcast %cst_34 : f32 to vector<16x8xf32>
    %72 = arith.mulf %71, %70 : vector<16x8xf32>
    %73 = math.exp %72 : vector<16x8xf32>
    %74 = arith.mulf %2, %73 : vector<16x8xf32>
    %75 = vector.extract_strided_slice %69 {offsets = [0, 0], sizes = [16, 8], strides = [1, 1]} : vector<16x32xf32> to vector<16x8xf32>
    %76 = arith.addf %74, %75 : vector<16x8xf32>
    %c264 = arith.constant 264 : index
    %c0_35 = arith.constant 0 : index
    %77 = vector.load %arg2[%c264, %c0_35] : memref<704x32xf32, #tpu.memory_space<vmem>>, vector<8x32xf32>
    %cst_36 = arith.constant dense<0.000000e+00> : vector<16x32xf32>
    %78 = tpu.matmul %76, %77, %cst_36 {dimension_numbers = #tpu.dot_dimension_numbers<[1], [0], [0], [1], [0, 0, 1, 1], [], []>} : vector<16x8xf32>, vector<8x32xf32>, vector<16x32xf32> -> vector<16x32xf32>
    %79 = vector.extract_strided_slice %3 {offsets = [7, 0], sizes = [1, 32], strides = [1, 1]} : vector<16x32xf32> to vector<1x32xf32>
    %80 = vector.broadcast %79 : vector<1x32xf32> to vector<16x32xf32>
    %81 = arith.addf %78, %80 : vector<16x32xf32>
    %cst_37 = arith.constant 0.000000e+00 : f32
    %82 = vector.broadcast %cst_37 : f32 to vector<16x32xf32>
    %83 = arith.maximumf %81, %82 : vector<16x32xf32>
    %c272 = arith.constant 272 : index
    %c0_38 = arith.constant 0 : index
    %84 = vector.load %arg2[%c272, %c0_38] : memref<704x32xf32, #tpu.memory_space<vmem>>, vector<32x32xf32>
    %cst_39 = arith.constant dense<0.000000e+00> : vector<16x32xf32>
    %85 = tpu.matmul %83, %84, %cst_39 {dimension_numbers = #tpu.dot_dimension_numbers<[1], [0], [0], [1], [0, 0, 1, 1], [], []>} : vector<16x32xf32>, vector<32x32xf32>, vector<16x32xf32> -> vector<16x32xf32>
    %86 = vector.extract_strided_slice %3 {offsets = [8, 0], sizes = [1, 32], strides = [1, 1]} : vector<16x32xf32> to vector<1x32xf32>
    %87 = vector.broadcast %86 : vector<1x32xf32> to vector<16x32xf32>
    %88 = arith.addf %85, %87 : vector<16x32xf32>
    %cst_40 = arith.constant 0.000000e+00 : f32
    %89 = vector.broadcast %cst_40 : f32 to vector<16x32xf32>
    %90 = arith.maximumf %88, %89 : vector<16x32xf32>
    %c304 = arith.constant 304 : index
    %c0_41 = arith.constant 0 : index
    %91 = vector.load %arg2[%c304, %c0_41] : memref<704x32xf32, #tpu.memory_space<vmem>>, vector<32x32xf32>
    %cst_42 = arith.constant dense<0.000000e+00> : vector<16x32xf32>
    %92 = tpu.matmul %90, %91, %cst_42 {dimension_numbers = #tpu.dot_dimension_numbers<[1], [0], [0], [1], [0, 0, 1, 1], [], []>} : vector<16x32xf32>, vector<32x32xf32>, vector<16x32xf32> -> vector<16x32xf32>
    %93 = vector.extract_strided_slice %3 {offsets = [9, 0], sizes = [1, 32], strides = [1, 1]} : vector<16x32xf32> to vector<1x32xf32>
    %94 = vector.broadcast %93 : vector<1x32xf32> to vector<16x32xf32>
    %95 = arith.addf %92, %94 : vector<16x32xf32>
    %c0_43 = arith.constant 0 : index
    %c0_44 = arith.constant 0 : index
    %96 = vector.load %arg3[%c0_43, %c0_44] : memref<208x32xf32, #tpu.memory_space<vmem>>, vector<176x32xf32>
    tpu.vector_store %arg3[%c0_43, %c0_44], %68 {strides = array<i32>} : memref<208x32xf32, #tpu.memory_space<vmem>>, vector<176x32xf32>,
    %c176 = arith.constant 176 : index
    %c0_45 = arith.constant 0 : index
    %97 = vector.load %arg3[%c176, %c0_45] : memref<208x32xf32, #tpu.memory_space<vmem>>, vector<16x32xf32>
    tpu.vector_store %arg3[%c176, %c0_45], %95 {strides = array<i32>} : memref<208x32xf32, #tpu.memory_space<vmem>>, vector<16x32xf32>,
    %c192 = arith.constant 192 : index
    %c0_46 = arith.constant 0 : index
    %98 = vector.load %arg3[%c192, %c0_46] : memref<208x32xf32, #tpu.memory_space<vmem>>, vector<16x32xf32>
    tpu.vector_store %arg3[%c192, %c0_46], %38 {strides = array<i32>} : memref<208x32xf32, #tpu.memory_space<vmem>>, vector<16x32xf32>,
    return
  }
  func.func @transform_0(%arg0: i32) -> (i32, i32) {
    %c0_i32 = arith.constant 0 : i32
    %c0_i32_0 = arith.constant 0 : i32
    return %arg0, %c0_i32 : i32, i32
  }
  func.func @transform_1(%arg0: i32) -> (i32, i32) {
    %c0_i32 = arith.constant 0 : i32
    %c0_i32_0 = arith.constant 0 : i32
    %c0_i32_1 = arith.constant 0 : i32
    return %c0_i32, %c0_i32_0 : i32, i32
  }
  func.func @transform_2(%arg0: i32) -> (i32, i32) {
    %c0_i32 = arith.constant 0 : i32
    %c0_i32_0 = arith.constant 0 : i32
    return %arg0, %c0_i32 : i32, i32
  }
}

</mosaic_0001>

<bundles_post_ra>
// kernel: tpu_custom_call.1
= control target key start
LH: loop header
LB: loop body
LE: loop exit
PB: predicated region body
PF: predicated region fallthrough
CT: control target
= control target key end

     0   :  { %s1488_s9 = smov 0   ;;  %s2025_s0 = inlined_call_operand.vmem [shape: f32[32,48], index: 0, kind: input, shape index: {}]   ;;  %s2026_s1 = inlined_call_operand.vmem [shape: f32[704,32], index: 1, kind: input, shape index: {}]   ;;  %s2027_s2 = inlined_call_operand.vmem [shape: f32[416,32], index: 2, kind: output, shape index: {}]  }
   0x1 LB: > { %s1322_s10 = sadd.s32 4294967295, %s1468_s9   ;;  %p1326_p0 = scmp.ge.s32.totalorder %s1468_s9, 1  ;;  %s1468_s9 = sphi %s1488_s9, %s12_s9  }
   0x2   : > { %p113_p1 = scmp.lt.s32.totalorder %s1468_s9, 3 }
   0x4   : > { %p114_p2 = pnand %p1326_p0, %p113_p1 }
   0x5   : > { %s1327_s15 = sshll.u32 (!%p114_p2), %s1322_s10, 1  ;;  %s141_s7 = smul.u32 (!%p114_p2), 26, %s1322_s10 }
   0x6   : > { %117 = sbr.rel (%p114_p2) target bundleno = 2284 (0x8ec), region = 28  ;;  %p136_p3 = scmp.lt.s32.totalorder (!%p114_p2), %s1327_s15, 3 }
   0x7   : > { %p142_p4 = scmp.lt.s32.totalorder (!%p114_p2), %s141_s7, 51  ;;  %s1470_s28 = smov (!%p114_p2), 40  }
   0x8   : > { %s1471_s29 = smov (!%p114_p2), 32   ;;  %s1472_s4 = smov (!%p114_p2), 88  }
   0xb   : > { %v155_v0 = vld [vmem:[%s2026_s1 + $0x20] sm:$0xff]  ;;  %v154_v1 = vld [vmem:[%s2026_s1 + $0x18] sm:$0xff]  ;;  %v153_v3 = vld [vmem:[%s2026_s1 + $0x10] sm:$0xff]  ;;  %s2029_s15 = smov (!%p136_p3, %s1327_s15), 3  ;;  %vm157_vm0 = vcmask 326656   ;;  %vm194_vm1 = vcmask 261120  }
   0xc   : > { %175 = vmatpush.msra.mxu0 %v155_v0  ;;  %v192_v2 = vld [vmem:[%s2026_s1 + $0x40] sm:$0xff]  ;;  %v152_v4 = vld [vmem:[%s2026_s1 + $0x8] sm:$0xff]  ;;  %s1328_s22 = sshll.u32 %s2029_s15, 3  ;;  %v191_v8 = vld [vmem:[%s2026_s1 + $0x38] sm:$0xff]  ;;  %s2031_s7 = smov (!%p142_p4, %s141_s7), 51  ;;  %vm1140_vm10 = vcmask 64512  }
   0xd   : > { %213 = vmatpush.msra.mxu1 %v192_v2  ;;  %v151_v5 = vld [vmem:[%s2026_s1] sm:$0xff]  ;;  %s1519_s27 = scalar_lea.vmem %s2025_s0, %s1328_s22  ;;  %v190_v9 = vld [vmem:[%s2026_s1 + $0x30] sm:$0xff]  ;;  %v189_v10 = vld [vmem:[%s2026_s1 + $0x28] sm:$0xff]  ;;  %s1329_s8 = sshll.u32 %s2031_s7, 3 }
   0xe   : > { %176 = vmatpush.msra.mxu0 %v154_v1  ;;  %v147_v6 = vld [vmem:[%s1519_s27] sm:$0xff]  ;;  %v148_v7 = vld [vmem:[%s1519_s27 + $0x8] sm:$0xff]  ;;  %v1538_v12 = vld [vmem:[%s2026_s1 + $0x150] sm:$0xff]  ;;  %s1594_s12 = scalar_lea.vmem %s2027_s2, %s1329_s8 }
   0xf   : > { %214 = vmatpush.msra.mxu1 %v191_v8  ;;  %v229_v11 = vld [vmem:[%s2026_s1 + $0x60] sm:$0xff]  ;;  %v156_v13 = vperm.slane %v1538_v12, 0  ;;  %v228_v20 = vld [vmem:[%s2026_s1 + $0x58] sm:$0xff]  ;;  %v227_v21 = vld [vmem:[%s2026_s1 + $0x50] sm:$0xff]  ;;  %v193_v24 = vperm.slane %v1538_v12, 1  ;;  %v230_v34 = vperm.slane %v1538_v12, 2 }
  0x10   : > { %177 = vmatpush.msra.mxu0 %v153_v3  ;;  %249 = vmatpush.msra.mxu2 %v229_v11  ;;  %v226_v22 = vld [vmem:[%s2026_s1 + $0x48] sm:$0xff]  ;;  %v265_v23 = vld [vmem:[%s2026_s1 + $0x80] sm:$0xff]  ;;  %v264_v31 = vld [vmem:[%s2026_s1 + $0x78] sm:$0xff]  ;;  %v266_v41 = vperm.slane %v1538_v12, 3 }
  0x11   : > { %215 = vmatpush.msra.mxu1 %v190_v9  ;;  %285 = vmatpush.msra.mxu3 %v265_v23  ;;  %v263_v32 = vld [vmem:[%s2026_s1 + $0x70] sm:$0xff]  ;;  %v262_v33 = vld [vmem:[%s2026_s1 + $0x68] sm:$0xff]  ;;  %v347_v58 = vld [vmem:[%s2026_s1 + $0xa0] sm:$0xff] }
  0x12   : > { %178 = vmatpush.msra.mxu0 %v152_v4  ;;  %250 = vmatpush.msra.mxu2 %v228_v20  ;;  %v346_v59 = vld [vmem:[%s2026_s1 + $0x98] sm:$0xff]  ;;  %v345_v60 = vld [vmem:[%s2026_s1 + $0x90] sm:$0xff]  ;;  %v344_v61 = vld [vmem:[%s2026_s1 + $0x88] sm:$0xff] }
  0x13   : > { %216 = vmatpush.msra.mxu1 %v189_v10  ;;  %286 = vmatpush.msra.mxu3 %v264_v31  ;;  %v383_v31 = vld [vmem:[%s2026_s1 + $0x170] sm:$0xff] }
  0x14   : > { %179 = vmatpush.msra.mxu0 %v151_v5  ;;  %251 = vmatpush.msra.mxu2 %v227_v21 }
  0x15   : > { %1330 = vmatmul.msk.f32.vlgmr.msra.gmra.mxu0 %vm157_vm0, %v147_v6  ;;  %287 = vmatpush.msra.mxu3 %v263_v32  ;;  %v384_v32 = vld [vmem:[%s2026_s1 + $0x178] sm:$0xff] }
  0x16   : > { %252 = vmatpush.msra.mxu2 %v226_v22  ;;  %366 = vmatpush.msrb.mxu1 %v347_v58  ;;  %v399_v58 = vld [vmem:[%s2026_s1 + $0x1f0] sm:$0xff] }
  0x17   : > { %288 = vmatpush.msra.mxu3 %v262_v33  ;;  %v385_v33 = vld [vmem:[%s2026_s1 + $0x180] sm:$0xff] }
  0x18   : > { %367 = vmatpush.msrb.mxu1 %v346_v59 }
  0x1a   : > { %368 = vmatpush.msrb.mxu1 %v345_v60  ;;  %v409_v60 = vld [vmem:[%s2026_s1 + $0x220] sm:$0xff] }
  0x1c   : > { %369 = vmatpush.msrb.mxu1 %v344_v61 }
  0x1d   : > { %1331 = vmatmul.msk.f32.gmra.mxu0 %vm157_vm0, %v148_v7 }
  0x92   : > { %v181_v14 = vpop.f32.mrf.mxu0 }
  0x93   : > { %v182_v15 = vadd.f32 %v181_v14, %v156_v13 }
  0x95   : > { %v187_v16 = vmax.f32 %v182_v15, 0.0  ;;  %377 = vst.msk [vmem:[#allocation2] sm:$0xff] %vm194_vm1, %v182_v15 }
  0x97   : > { %1332 = vmatmul.msk.f32.vlgmr.msra.gmra.mxu1 %vm194_vm1, %v187_v16 }
  0x9a   : > { %v184_v17 = vpop.f32.mrf.mxu0 }
  0x9b   : > { %v185_v18 = vadd.f32 %v184_v17, %v156_v13 }
  0x9d   : > { %v188_v19 = vmax.f32 %v185_v18, 0.0  ;;  %378 = vst.msk [vmem:[#allocation2 + $0x8] sm:$0xff] %vm194_vm1, %v185_v18 }
  0x9f   : > { %1333 = vmatmul.msk.f32.gmra.mxu1 %vm194_vm1, %v188_v19 }
 0x114   : > { %v218_v25 = vpop.f32.mrf.mxu1 }
 0x115   : > { %v219_v26 = vadd.f32 %v218_v25, %v193_v24 }
 0x117   : > { %v224_v27 = vmax.f32 %v219_v26, 0.0 }
 0x119   : > { %1334 = vmatmul.msk.f32.vlgmr.msra.gmra.mxu2 %vm194_vm1, %v224_v27  ;;  %v404_v27 = vld [vmem:[#allocation2 + $0x8] sm:$0xff] }
 0x11c   : > { %v221_v28 = vpop.f32.mrf.mxu1 }
 0x11d   : > { %v222_v29 = vadd.f32 %v221_v28, %v193_v24  ;;  %v381_v28 = vld [vmem:[%s2026_s1 + $0x160] sm:$0xff] }
 0x11f   : > { %v225_v30 = vmax.f32 %v222_v29, 0.0  ;;  %v403_v29 = vld [vmem:[#allocation2] sm:$0xff] }
 0x121   : > { %1335 = vmatmul.msk.f32.gmra.mxu2 %vm194_vm1, %v225_v30  ;;  %v382_v30 = vld [vmem:[%s2026_s1 + $0x168] sm:$0xff] }
 0x19c   : > { %v254_v35 = vpop.f32.mrf.mxu2 }
 0x19d   : > { %v255_v36 = vadd.f32 %v254_v35, %v230_v34  ;;  %v387_v35 = vld [vmem:[%s2026_s1 + $0x190] sm:$0xff] }
 0x19f   : > { %v260_v37 = vmax.f32 %v255_v36, 0.0  ;;  %v388_v36 = vld [vmem:[%s2026_s1 + $0x198] sm:$0xff] }
 0x1a1   : > { %1336 = vmatmul.msk.f32.vlgmr.msra.gmra.mxu3 %vm194_vm1, %v260_v37  ;;  %v389_v37 = vld [vmem:[%s2026_s1 + $0x1a0] sm:$0xff] }
 0x1a4   : > { %v257_v38 = vpop.f32.mrf.mxu2 }
 0x1a5   : > { %v258_v39 = vadd.f32 %v257_v38, %v230_v34  ;;  %v386_v34 = vld [vmem:[%s2026_s1 + $0x188] sm:$0xff] }
 0x1a6   : > { %v390_v38 = vld [vmem:[%s2026_s1 + $0x1a8] sm:$0xff] }
 0x1a7   : > { %v261_v40 = vmax.f32 %v258_v39, 0.0  ;;  %v391_v39 = vld [vmem:[%s2026_s1 + $0x1b0] sm:$0xff] }
 0x1a9   : > { %1337 = vmatmul.msk.f32.gmra.mxu3 %vm194_vm1, %v261_v40  ;;  %v392_v40 = vld [vmem:[%s2026_s1 + $0x1b8] sm:$0xff] }
 0x224   : > { %v290_v42 = vpop.f32.mrf.mxu3 }
 0x225   : > { %v291_v43 = vadd.f32 %v290_v42, %v266_v41  ;;  %v603_v42 = vld [vmem:[%s2026_s1 + $0xc0] sm:$0xff] }
 0x226   : > { %683 = vmatpush.msrb.mxu3 %v603_v42 }
 0x227   : > { %v296_v44 = vsel %vm194_vm1, %v291_v43, -inf }
 0x228   : > { %297 = vmax.xlane.f32.xlu0 %v296_v44  ;;  %v601_v44 = vld [vmem:[%s2026_s1 + $0xb0] sm:$0xff] }
 0x22c   : > { %v293_v45 = vpop.f32.mrf.mxu3 }
 0x22d   : > { %v294_v46 = vadd.f32 %v293_v45, %v266_v41  ;;  %v393_v41 = vld [vmem:[%s2026_s1 + $0x1c0] sm:$0xff]  ;;  %v394_v45 = vld [vmem:[%s2026_s1 + $0x1c8] sm:$0xff] }
 0x22f   : > { %v299_v47 = vsel %vm194_vm1, %v294_v46, -inf }
 0x230   : > { %300 = vmax.xlane.f32.xlu0 %v299_v47  ;;  %v395_v47 = vld [vmem:[%s2026_s1 + $0x1d0] sm:$0xff] }
 0x29b   : > { %v298_v48 = vpop.xlane.xlu0 %297 }
 0x29c   : > { %v302_v49 = vsub.f32 %v291_v43, %v298_v48  ;;  %v602_v43 = vld [vmem:[%s2026_s1 + $0xb8] sm:$0xff] }
 0x29d   : > { %684 = vmatpush.msrb.mxu3 %v602_v43  ;;  %v396_v48 = vld [vmem:[%s2026_s1 + $0x1d8] sm:$0xff] }
 0x29e   : > { %v304_v50 = vmul.f32 1.442695, %v302_v49  ;;  %v397_v49 = vld [vmem:[%s2026_s1 + $0x1e0] sm:$0xff] }
 0x29f   : > { %685 = vmatpush.msrb.mxu3 %v601_v44  ;;  %v779_v44 = vld [vmem:[%s2026_s1 + $0xe0] sm:$0xff] }
 0x2a0   : > { %1447 = vpow2.f32 %v304_v50  ;;  %v407_v50 = vld [vmem:[%s2026_s1 + $0x210] sm:$0xff]  ;;  %859 = vmatpush.msrb.mxu0 %v779_v44 }
 0x2a3   : > { %v301_v51 = vpop.xlane.xlu0 %300 }
 0x2a4   : > { %v303_v52 = vsub.f32 %v294_v46, %v301_v51  ;;  %v600_v46 = vld [vmem:[%s2026_s1 + $0xa8] sm:$0xff] }
 0x2a5   : > { %686 = vmatpush.msrb.mxu3 %v600_v46  ;;  %v778_v46 = vld [vmem:[%s2026_s1 + $0xd8] sm:$0xff] }
 0x2a6   : > { %v1448_v53 = vpop.eup %1447  ;;  %v306_v54 = vmul.f32 1.442695, %v303_v52  ;;  %860 = vmatpush.msrb.mxu0 %v778_v46 }
 0x2a7   : > { %v308_v55 = vsel %vm194_vm1, %v1448_v53, 0.0 }
 0x2a8   : > { %1449 = vpow2.f32 %v306_v54  ;;  %309 = vadd.xlane.f32.xlu1 %v308_v55  ;;  %v408_v55 = vld [vmem:[%s2026_s1 + $0x218] sm:$0xff] }
 0x2ae   : > { %v1450_v56 = vpop.eup %1449 }
 0x2af   : > { %v311_v57 = vsel %vm194_vm1, %v1450_v56, 0.0 }
 0x2b0   : > { %312 = vadd.xlane.f32.xlu1 %v311_v57 }
 0x31b   : > { %v310_v62 = vpop.xlane.xlu1 %309 }
 0x31c   : > { %1451 = vrcp.f32 %v310_v62  ;;  %v325_v3 = vand.u32 2147483648, %v310_v62  ;;  %v323_v5 = vand.u32 2147483647, %v310_v62  ;;  %vm319_vm3 = vweird.f32 %v310_v62 }
 0x31e   : > { %v326_v8 = vor.u32 1.1754944e-38, %v325_v3  ;;  %vm324_vm5 = vcmp.eq.f32.partialorder %v323_v5, 8.507059e+37 }
 0x322   : > { %v1452_v63 = vpop.eup %1451 }
 0x323   : > { %v315_v0 = vmul.f32 %v1452_v63, %v310_v62  ;;  %v313_v1 = vpop.xlane.xlu1 %312  ;;  %vm320_vm2 = vweird.f32 %v1452_v63 }
 0x324   : > { %1453 = vrcp.f32 %v313_v1  ;;  %vm321_vm4 = vmor %vm319_vm3, %vm320_vm2  ;;  %v340_v15 = vand.u32 2147483648, %v313_v1  ;;  %v338_v17 = vand.u32 2147483647, %v313_v1  ;;  %vm334_vm7 = vweird.f32 %v313_v1 }
 0x325   : > { %v316_v2 = vsub.f32 1.0, %v315_v0 }
 0x326   : > { %v341_v19 = vor.u32 1.1754944e-38, %v340_v15  ;;  %vm339_vm9 = vcmp.eq.f32.partialorder %v338_v17, 8.507059e+37 }
 0x327   : > { %v317_v4 = vmul.f32 %v1452_v63, %v316_v2 }
 0x329   : > { %v318_v6 = vadd.f32 %v1452_v63, %v317_v4  ;;  %v401_v4 = vld [vmem:[%s2026_s1 + $0x200] sm:$0xff] }
 0x32a   : > { %v1454_v7 = vpop.eup %1453 }
 0x32b   : > { %v330_v9 = vmul.f32 %v1454_v7, %v313_v1  ;;  %v322_v10 = vsel %vm321_vm4, %v1452_v63, %v318_v6  ;;  %vm335_vm6 = vweird.f32 %v1454_v7  ;;  %v400_v63 = vld [vmem:[%s2026_s1 + $0x1f8] sm:$0xff]  ;;  %v410_v1 = vld [vmem:[%s2026_s1 + $0x228] sm:$0xff]  ;;  %v411_v6 = vld [vmem:[%s2026_s1 + $0x230] sm:$0xff] }
 0x32c   : > { %v327_v11 = vsel %vm324_vm5, %v326_v8, %v322_v10  ;;  %vm336_vm8 = vmor %vm334_vm7, %vm335_vm6 }
 0x32d   : > { %v331_v13 = vsub.f32 1.0, %v330_v9  ;;  %v328_v14 = vmul.f32 %v1448_v53, %v327_v11  ;;  %v398_v53 = vld [vmem:[%s2026_s1 + $0x1e8] sm:$0xff]  ;;  %v412_v11 = vld [vmem:[%s2026_s1 + $0x238] sm:$0xff] }
 0x32e   : > { %v402_v9 = vld [vmem:[%s2026_s1 + $0x208] sm:$0xff] }
 0x32f   : > { %v332_v16 = vmul.f32 %v1454_v7, %v331_v13  ;;  %1338 = vmatmul.msk.f32.vlgmr.msrb.gmra.mxu1 %vm194_vm1, %v328_v14  ;;  %1264 = vst.msk [vmem:[%s1594_s12 + $0xc0] sm:$0xff] %vm194_vm1, %v328_v14 }
 0x331   : > { %v333_v18 = vadd.f32 %v1454_v7, %v332_v16  ;;  %v413_v16 = vld [vmem:[%s2026_s1 + $0x240] sm:$0xff] }
 0x333   : > { %v337_v20 = vsel %vm336_vm8, %v1454_v7, %v333_v18 }
 0x334   : > { %v342_v21 = vsel %vm339_vm9, %v341_v19, %v337_v20  ;;  %v414_v20 = vld [vmem:[%s2026_s1 + $0x248] sm:$0xff] }
 0x335   : > { %v343_v22 = vmul.f32 %v1450_v56, %v342_v21 }
 0x337   : > { %1339 = vmatmul.msk.f32.gmra.mxu1 %vm194_vm1, %v343_v22  ;;  %1265 = vst.msk [vmem:[%s1594_s12 + $0xc8] sm:$0xff] %vm194_vm1, %v343_v22 }
 0x3ac   : > { %v371_v23 = vpop.f32.mrf.mxu1 }
 0x3ad   : > { %379 = vst.msk [vmem:[#allocation2 + $0x10] sm:$0xff] %vm194_vm1, %v371_v23 }
 0x3b4   : > { %v374_v24 = vpop.f32.mrf.mxu1  ;;  %v405_v26 = vld [vmem:[#allocation2 + $0x10] sm:$0xff] }
 0x3b5   : > { %380 = vst.msk [vmem:[#allocation2 + $0x18] sm:$0xff] %vm194_vm1, %v374_v24  ;;  %v415_v24 = vld [vmem:[%s2026_s1 + $0x250] sm:$0xff] }
 0x3bc   : > { %v406_v25 = vld [vmem:[#allocation2 + $0x18] sm:$0xff] }
 0x3bd   : > { %507 = vmatpush.msrb.mxu2 %v406_v25 }
 0x3bf   : > { %508 = vmatpush.msrb.mxu2 %v405_v26 }
 0x3c1   : > { %509 = vmatpush.msrb.mxu2 %v404_v27 }
 0x3c3   : > { %510 = vmatpush.msrb.mxu2 %v403_v29 }
 0x3c4   : > { %1340 = vmatmul.msk.f32.vlgmr.msrb.gmra.mxu2 %vm194_vm1, %v381_v28  ;;  %v416_v28 = vld [vmem:[%s2026_s1 + $0x258] sm:$0xff] }
 0x3cc   : > { %1341 = vmatmul.msk.f32.gmra.mxu2 %vm194_vm1, %v382_v30 }
 0x3d4   : > { %1342 = vmatmul.msk.f32.gmra.mxu2 %vm194_vm1, %v383_v31 }
 0x3dc   : > { %1343 = vmatmul.msk.f32.gmra.mxu2 %vm194_vm1, %v384_v32  ;;  %v417_v32 = vld [vmem:[%s2026_s1 + $0x260] sm:$0xff] }
 0x3e4   : > { %1344 = vmatmul.msk.f32.gmra.mxu2 %vm194_vm1, %v385_v33 }
 0x3ec   : > { %1345 = vmatmul.msk.f32.gmra.mxu2 %vm194_vm1, %v386_v34 }
 0x3f4   : > { %1346 = vmatmul.msk.f32.gmra.mxu2 %vm194_vm1, %v387_v35 }
 0x3fc   : > { %1347 = vmatmul.msk.f32.gmra.mxu2 %vm194_vm1, %v388_v36  ;;  %v418_v36 = vld [vmem:[%s2026_s1 + $0x268] sm:$0xff] }
 0x404   : > { %1348 = vmatmul.msk.f32.gmra.mxu2 %vm194_vm1, %v389_v37 }
 0x40c   : > { %1349 = vmatmul.msk.f32.gmra.mxu2 %vm194_vm1, %v390_v38 }
 0x414   : > { %1350 = vmatmul.msk.f32.gmra.mxu2 %vm194_vm1, %v391_v39 }
 0x41c   : > { %1351 = vmatmul.msk.f32.gmra.mxu2 %vm194_vm1, %v392_v40  ;;  %v419_v40 = vld [vmem:[%s2026_s1 + $0x270] sm:$0xff] }
 0x424   : > { %1352 = vmatmul.msk.f32.gmra.mxu2 %vm194_vm1, %v393_v41 }
 0x42c   : > { %1353 = vmatmul.msk.f32.gmra.mxu2 %vm194_vm1, %v394_v45  ;;  %v420_v45 = vld [vmem:[%s2026_s1 + $0x278] sm:$0xff] }
 0x434   : > { %1354 = vmatmul.msk.f32.gmra.mxu2 %vm194_vm1, %v395_v47 }
 0x43c   : > { %1355 = vmatmul.msk.f32.gmra.mxu2 %vm194_vm1, %v396_v48 }
 0x444   : > { %1356 = vmatmul.msk.f32.gmra.mxu2 %vm194_vm1, %v397_v49  ;;  %v777_v49 = vld [vmem:[%s2026_s1 + $0xd0] sm:$0xff] }
 0x445   : > { %861 = vmatpush.msrb.mxu0 %v777_v49 }
 0x447   : > { %v512_v51 = vpop.f32.mrf.mxu2 }
 0x448   : > { %v513_v52 = vadd.f32 %v512_v51, %v407_v50  ;;  %v776_v51 = vld [vmem:[%s2026_s1 + $0xc8] sm:$0xff] }
 0x449   : > { %862 = vmatpush.msrb.mxu0 %v776_v51 }
 0x44a   : > { %v578_v54 = vmax.f32 %v513_v52, 0.0  ;;  %v421_v52 = vld [vmem:[%s2026_s1 + $0x280] sm:$0xff] }
 0x44c   : > { %1357 = vmatmul.msk.f32.gmra.mxu2 %vm194_vm1, %v398_v53  ;;  %1362 = vmatmul.msk.f32.vlgmr.msrb.gmra.mxu3 %vm194_vm1, %v578_v54 }
 0x44f   : > { %v515_v56 = vpop.f32.mrf.mxu2 }
 0x450   : > { %v516_v57 = vadd.f32 %v515_v56, %v408_v55  ;;  %v422_v56 = vld [vmem:[%s2026_s1 + $0x288] sm:$0xff] }
 0x452   : > { %v579_v59 = vmax.f32 %v516_v57, 0.0 }
 0x454   : > { %1358 = vmatmul.msk.f32.gmra.mxu2 %vm194_vm1, %v399_v58  ;;  %1363 = vmatmul.msk.f32.gmra.mxu3 %vm194_vm1, %v579_v59 }
 0x457   : > { %v518_v61 = vpop.f32.mrf.mxu2 }
 0x458   : > { %v519_v62 = vadd.f32 %v518_v61, %v409_v60  ;;  %v423_v60 = vld [vmem:[%s2026_s1 + $0x290] sm:$0xff] }
 0x45a   : > { %v580_v0 = vmax.f32 %v519_v62, 0.0 }
 0x45c   : > { %1359 = vmatmul.msk.f32.gmra.mxu2 %vm194_vm1, %v400_v63  ;;  %1364 = vmatmul.msk.f32.gmra.mxu3 %vm194_vm1, %v580_v0  ;;  %v1785_v0 = vperm.slane %v1538_v12, 4 }
 0x45f   : > { %v521_v2 = vpop.f32.mrf.mxu2 }
 0x460   : > { %v522_v3 = vadd.f32 %v521_v2, %v410_v1  ;;  %v424_v1 = vld [vmem:[%s2026_s1 + $0x298] sm:$0xff] }
 0x462   : > { %v581_v5 = vmax.f32 %v522_v3, 0.0 }
 0x464   : > { %1360 = vmatmul.msk.f32.gmra.mxu2 %vm194_vm1, %v401_v4  ;;  %1365 = vmatmul.msk.f32.gmra.mxu3 %vm194_vm1, %v581_v5 }
 0x467   : > { %v524_v7 = vpop.f32.mrf.mxu2 }
 0x468   : > { %v525_v8 = vadd.f32 %v524_v7, %v411_v6 }
 0x46a   : > { %v582_v10 = vmax.f32 %v525_v8, 0.0  ;;  %v425_v8 = vld [vmem:[%s2026_s1 + $0x2a0] sm:$0xff] }
 0x46c   : > { %1361 = vmatmul.msk.f32.gmra.mxu2 %vm194_vm1, %v402_v9  ;;  %1366 = vmatmul.msk.f32.gmra.mxu3 %vm194_vm1, %v582_v10 }
 0x46f   : > { %v527_v13 = vpop.f32.mrf.mxu2 }
 0x470   : > { %v528_v14 = vadd.f32 %v527_v13, %v412_v11 }
 0x472   : > { %v583_v15 = vmax.f32 %v528_v14, 0.0 }
 0x474   : > { %1367 = vmatmul.msk.f32.gmra.mxu3 %vm194_vm1, %v583_v15 }
 0x477   : > { %v530_v17 = vpop.f32.mrf.mxu2 }
 0x478   : > { %v531_v18 = vadd.f32 %v530_v17, %v413_v16  ;;  %v426_v16 = vld [vmem:[%s2026_s1 + $0x2a8] sm:$0xff] }
 0x47a   : > { %v584_v19 = vmax.f32 %v531_v18, 0.0 }
 0x47c   : > { %1368 = vmatmul.msk.f32.gmra.mxu3 %vm194_vm1, %v584_v19 }
 0x47f   : > { %v533_v21 = vpop.f32.mrf.mxu2 }
 0x480   : > { %v534_v22 = vadd.f32 %v533_v21, %v414_v20 }
 0x482   : > { %v585_v23 = vmax.f32 %v534_v22, 0.0 }
 0x484   : > { %1369 = vmatmul.msk.f32.gmra.mxu3 %vm194_vm1, %v585_v23  ;;  %v427_v23 = vld [vmem:[%s2026_s1 + $0x2b0] sm:$0xff] }
 0x487   : > { %v536_v25 = vpop.f32.mrf.mxu2 }
 0x488   : > { %v537_v26 = vadd.f32 %v536_v25, %v415_v24 }
 0x48a   : > { %v586_v27 = vmax.f32 %v537_v26, 0.0 }
 0x48c   : > { %1370 = vmatmul.msk.f32.gmra.mxu3 %vm194_vm1, %v586_v27 }
 0x48f   : > { %v539_v29 = vpop.f32.mrf.mxu2 }
 0x490   : > { %v540_v30 = vadd.f32 %v539_v29, %v416_v28 }
 0x492   : > { %v587_v31 = vmax.f32 %v540_v30, 0.0  ;;  %v428_v30 = vld [vmem:[%s2026_s1 + $0x2b8] sm:$0xff] }
 0x494   : > { %1371 = vmatmul.msk.f32.gmra.mxu3 %vm194_vm1, %v587_v31 }
 0x497   : > { %v542_v33 = vpop.f32.mrf.mxu2 }
 0x498   : > { %v543_v34 = vadd.f32 %v542_v33, %v417_v32 }
 0x49a   : > { %v588_v35 = vmax.f32 %v543_v34, 0.0 }
 0x49c   : > { %1372 = vmatmul.msk.f32.gmra.mxu3 %vm194_vm1, %v588_v35 }
 0x49f   : > { %v545_v37 = vpop.f32.mrf.mxu2 }
 0x4a0   : > { %v546_v38 = vadd.f32 %v545_v37, %v418_v36 }
 0x4a2   : > { %v589_v39 = vmax.f32 %v546_v38, 0.0 }
 0x4a4   : > { %1373 = vmatmul.msk.f32.gmra.mxu3 %vm194_vm1, %v589_v39 }
 0x4a7   : > { %v548_v41 = vpop.f32.mrf.mxu2 }
 0x4a8   : > { %v549_v42 = vadd.f32 %v548_v41, %v419_v40 }
 0x4aa   : > { %v590_v43 = vmax.f32 %v549_v42, 0.0 }
 0x4ac   : > { %1374 = vmatmul.msk.f32.gmra.mxu3 %vm194_vm1, %v590_v43 }
 0x4af   : > { %v551_v47 = vpop.f32.mrf.mxu2 }
 0x4b0   : > { %v552_v48 = vadd.f32 %v551_v47, %v420_v45 }
 0x4b2   : > { %v591_v50 = vmax.f32 %v552_v48, 0.0 }
 0x4b4   : > { %1375 = vmatmul.msk.f32.gmra.mxu3 %vm194_vm1, %v591_v50 }
 0x4b7   : > { %v554_v53 = vpop.f32.mrf.mxu2 }
 0x4b8   : > { %v555_v54 = vadd.f32 %v554_v53, %v421_v52 }
 0x4ba   : > { %v592_v55 = vmax.f32 %v555_v54, 0.0 }
 0x4bc   : > { %1376 = vmatmul.msk.f32.gmra.mxu3 %vm194_vm1, %v592_v55 }
 0x4bf   : > { %v557_v57 = vpop.f32.mrf.mxu2 }
 0x4c0   : > { %v558_v58 = vadd.f32 %v557_v57, %v422_v56 }
 0x4c2   : > { %v593_v59 = vmax.f32 %v558_v58, 0.0  ;;  %v955_v58 = vld [vmem:[%s2026_s1 + $0x100] sm:$0xff] }
 0x4c3   : > { %1035 = vmatpush.msra.mxu1 %v955_v58 }
 0x4c4   : > { %1377 = vmatmul.msk.f32.gmra.mxu3 %vm194_vm1, %v593_v59 }
 0x4c7   : > { %v560_v61 = vpop.f32.mrf.mxu2 }
 0x4c8   : > { %v561_v62 = vadd.f32 %v560_v61, %v423_v60  ;;  %v954_v61 = vld [vmem:[%s2026_s1 + $0xf8] sm:$0xff] }
 0x4c9   : > { %1036 = vmatpush.msra.mxu1 %v954_v61 }
 0x4ca   : > { %v594_v63 = vmax.f32 %v561_v62, 0.0 }
 0x4cc   : > { %1378 = vmatmul.msk.f32.gmra.mxu3 %vm194_vm1, %v594_v63  ;;  %v953_v63 = vld [vmem:[%s2026_s1 + $0xf0] sm:$0xff] }
 0x4cd   : > { %1037 = vmatpush.msra.mxu1 %v953_v63 }
 0x4cf   : > { %v563_v2 = vpop.f32.mrf.mxu2  ;;  %v688_v3 = vpop.f32.mrf.mxu3 }
 0x4d0   : > { %v564_v4 = vadd.f32 %v563_v2, %v424_v1  ;;  %v689_v5 = vadd.f32 %v688_v3, %v1785_v0  ;;  %v952_v1 = vld [vmem:[%s2026_s1 + $0xe8] sm:$0xff] }
 0x4d1   : > { %1038 = vmatpush.msra.mxu1 %v952_v1 }
 0x4d2   : > { %v595_v6 = vmax.f32 %v564_v4, 0.0  ;;  %v754_v7 = vmax.f32 %v689_v5, 0.0 }
 0x4d4   : > { %1379 = vmatmul.msk.f32.gmra.mxu3 %vm194_vm1, %v595_v6  ;;  %1384 = vmatmul.msk.f32.vlgmr.msrb.gmra.mxu0 %vm194_vm1, %v754_v7 }
 0x4d7   : > { %v566_v9 = vpop.f32.mrf.mxu2  ;;  %v691_v10 = vpop.f32.mrf.mxu3 }
 0x4d8   : > { %v567_v11 = vadd.f32 %v566_v9, %v425_v8  ;;  %v692_v13 = vadd.f32 %v691_v10, %v1785_v0 }
 0x4da   : > { %v596_v14 = vmax.f32 %v567_v11, 0.0  ;;  %v755_v15 = vmax.f32 %v692_v13, 0.0  ;;  %v1852_v11 = vperm.slane %v1538_v12, 5 }
 0x4dc   : > { %1380 = vmatmul.msk.f32.gmra.mxu3 %vm194_vm1, %v596_v14  ;;  %1385 = vmatmul.msk.f32.gmra.mxu0 %vm194_vm1, %v755_v15 }
 0x4df   : > { %v569_v17 = vpop.f32.mrf.mxu2  ;;  %v694_v18 = vpop.f32.mrf.mxu3 }
 0x4e0   : > { %v570_v19 = vadd.f32 %v569_v17, %v426_v16  ;;  %v695_v20 = vadd.f32 %v694_v18, %v1785_v0 }
 0x4e2   : > { %v597_v21 = vmax.f32 %v570_v19, 0.0  ;;  %v756_v22 = vmax.f32 %v695_v20, 0.0 }
 0x4e4   : > { %1381 = vmatmul.msk.f32.gmra.mxu3 %vm194_vm1, %v597_v21  ;;  %1386 = vmatmul.msk.f32.gmra.mxu0 %vm194_vm1, %v756_v22 }
 0x4e7   : > { %v572_v24 = vpop.f32.mrf.mxu2  ;;  %v697_v25 = vpop.f32.mrf.mxu3 }
 0x4e8   : > { %v573_v26 = vadd.f32 %v572_v24, %v427_v23  ;;  %v698_v27 = vadd.f32 %v697_v25, %v1785_v0 }
 0x4ea   : > { %v598_v28 = vmax.f32 %v573_v26, 0.0  ;;  %v757_v29 = vmax.f32 %v698_v27, 0.0 }
 0x4ec   : > { %1382 = vmatmul.msk.f32.gmra.mxu3 %vm194_vm1, %v598_v28  ;;  %1387 = vmatmul.msk.f32.gmra.mxu0 %vm194_vm1, %v757_v29 }
 0x4ef   : > { %v575_v31 = vpop.f32.mrf.mxu2  ;;  %v700_v32 = vpop.f32.mrf.mxu3 }
 0x4f0   : > { %v576_v33 = vadd.f32 %v575_v31, %v428_v30  ;;  %v701_v34 = vadd.f32 %v700_v32, %v1785_v0 }
 0x4f2   : > { %v599_v35 = vmax.f32 %v576_v33, 0.0  ;;  %v758_v36 = vmax.f32 %v701_v34, 0.0 }
 0x4f4   : > { %1383 = vmatmul.msk.f32.gmra.mxu3 %vm194_vm1, %v599_v35  ;;  %1388 = vmatmul.msk.f32.gmra.mxu0 %vm194_vm1, %v758_v36 }
 0x4f7   : > { %v703_v37 = vpop.f32.mrf.mxu3 }
 0x4f8   : > { %v704_v38 = vadd.f32 %v703_v37, %v1785_v0 }
 0x4fa   : > { %v759_v39 = vmax.f32 %v704_v38, 0.0 }
 0x4fc   : > { %1389 = vmatmul.msk.f32.gmra.mxu0 %vm194_vm1, %v759_v39 }
 0x4ff   : > { %v706_v40 = vpop.f32.mrf.mxu3 }
 0x500   : > { %v707_v41 = vadd.f32 %v706_v40, %v1785_v0 }
 0x502   : > { %v760_v42 = vmax.f32 %v707_v41, 0.0 }
 0x504   : > { %1390 = vmatmul.msk.f32.gmra.mxu0 %vm194_vm1, %v760_v42 }
 0x507   : > { %v709_v43 = vpop.f32.mrf.mxu3 }
 0x508   : > { %v710_v44 = vadd.f32 %v709_v43, %v1785_v0 }
 0x50a   : > { %v761_v45 = vmax.f32 %v710_v44, 0.0 }
 0x50c   : > { %1391 = vmatmul.msk.f32.gmra.mxu0 %vm194_vm1, %v761_v45 }
 0x50f   : > { %v712_v46 = vpop.f32.mrf.mxu3 }
 0x510   : > { %v713_v47 = vadd.f32 %v712_v46, %v1785_v0 }
 0x512   : > { %v762_v48 = vmax.f32 %v713_v47, 0.0 }
 0x514   : > { %1392 = vmatmul.msk.f32.gmra.mxu0 %vm194_vm1, %v762_v48 }
 0x517   : > { %v715_v49 = vpop.f32.mrf.mxu3 }
 0x518   : > { %v716_v50 = vadd.f32 %v715_v49, %v1785_v0 }
 0x51a   : > { %v763_v51 = vmax.f32 %v716_v50, 0.0 }
 0x51c   : > { %1393 = vmatmul.msk.f32.gmra.mxu0 %vm194_vm1, %v763_v51 }
 0x51f   : > { %v718_v52 = vpop.f32.mrf.mxu3 }
 0x520   : > { %v719_v53 = vadd.f32 %v718_v52, %v1785_v0 }
 0x522   : > { %v764_v54 = vmax.f32 %v719_v53, 0.0 }
 0x524   : > { %1394 = vmatmul.msk.f32.gmra.mxu0 %vm194_vm1, %v764_v54 }
 0x527   : > { %v721_v55 = vpop.f32.mrf.mxu3 }
 0x528   : > { %v722_v56 = vadd.f32 %v721_v55, %v1785_v0 }
 0x52a   : > { %v765_v57 = vmax.f32 %v722_v56, 0.0 }
 0x52c   : > { %1395 = vmatmul.msk.f32.gmra.mxu0 %vm194_vm1, %v765_v57 }
 0x52f   : > { %v724_v59 = vpop.f32.mrf.mxu3 }
 0x530   : > { %v725_v60 = vadd.f32 %v724_v59, %v1785_v0 }
 0x532   : > { %v766_v62 = vmax.f32 %v725_v60, 0.0 }
 0x534   : > { %1396 = vmatmul.msk.f32.gmra.mxu0 %vm194_vm1, %v766_v62 }
 0x537   : > { %v727_v2 = vpop.f32.mrf.mxu3 }
 0x538   : > { %v728_v3 = vadd.f32 %v727_v2, %v1785_v0 }
 0x53a   : > { %v767_v4 = vmax.f32 %v728_v3, 0.0 }
 0x53c   : > { %1397 = vmatmul.msk.f32.gmra.mxu0 %vm194_vm1, %v767_v4 }
 0x53f   : > { %v730_v5 = vpop.f32.mrf.mxu3 }
 0x540   : > { %v731_v6 = vadd.f32 %v730_v5, %v1785_v0 }
 0x542   : > { %v768_v7 = vmax.f32 %v731_v6, 0.0 }
 0x544   : > { %1398 = vmatmul.msk.f32.gmra.mxu0 %vm194_vm1, %v768_v7 }
 0x547   : > { %v733_v8 = vpop.f32.mrf.mxu3 }
 0x548   : > { %v734_v9 = vadd.f32 %v733_v8, %v1785_v0 }
 0x54a   : > { %v769_v10 = vmax.f32 %v734_v9, 0.0 }
 0x54c   : > { %1399 = vmatmul.msk.f32.gmra.mxu0 %vm194_vm1, %v769_v10 }
 0x54f   : > { %v736_v13 = vpop.f32.mrf.mxu3 }
 0x550   : > { %v737_v14 = vadd.f32 %v736_v13, %v1785_v0 }
 0x551   : > { %v864_v15 = vpop.f32.mrf.mxu0 }
 0x552   : > { %v770_v16 = vmax.f32 %v737_v14, 0.0  ;;  %v865_v17 = vadd.f32 %v864_v15, %v1852_v11 }
 0x554   : > { %v930_v18 = vmax.f32 %v865_v17, 0.0  ;;  %1400 = vmatmul.msk.f32.gmra.mxu0 %vm194_vm1, %v770_v16  ;;  %v1899_v17 = vperm.slane %v1538_v12, 6 }
 0x556   : > { %1406 = vmatmul.msk.f32.vlgmr.msra.gmra.mxu1 %vm194_vm1, %v930_v18 }
 0x557   : > { %v739_v19 = vpop.f32.mrf.mxu3 }
 0x558   : > { %v740_v20 = vadd.f32 %v739_v19, %v1785_v0 }
 0x559   : > { %v867_v21 = vpop.f32.mrf.mxu0 }
 0x55a   : > { %v771_v22 = vmax.f32 %v740_v20, 0.0  ;;  %v868_v23 = vadd.f32 %v867_v21, %v1852_v11 }
 0x55c   : > { %v931_v24 = vmax.f32 %v868_v23, 0.0  ;;  %1401 = vmatmul.msk.f32.gmra.mxu0 %vm194_vm1, %v771_v22 }
 0x55e   : > { %1407 = vmatmul.msk.f32.gmra.mxu1 %vm194_vm1, %v931_v24 }
 0x55f   : > { %v742_v25 = vpop.f32.mrf.mxu3 }
 0x560   : > { %v743_v26 = vadd.f32 %v742_v25, %v1785_v0 }
 0x561   : > { %v870_v27 = vpop.f32.mrf.mxu0 }
 0x562   : > { %v772_v28 = vmax.f32 %v743_v26, 0.0  ;;  %v871_v29 = vadd.f32 %v870_v27, %v1852_v11 }
 0x564   : > { %v932_v30 = vmax.f32 %v871_v29, 0.0  ;;  %1402 = vmatmul.msk.f32.gmra.mxu0 %vm194_vm1, %v772_v28 }
 0x566   : > { %1408 = vmatmul.msk.f32.gmra.mxu1 %vm194_vm1, %v932_v30 }
 0x567   : > { %v745_v31 = vpop.f32.mrf.mxu3 }
 0x568   : > { %v746_v32 = vadd.f32 %v745_v31, %v1785_v0 }
 0x569   : > { %v873_v33 = vpop.f32.mrf.mxu0 }
 0x56a   : > { %v773_v34 = vmax.f32 %v746_v32, 0.0  ;;  %v874_v35 = vadd.f32 %v873_v33, %v1852_v11 }
 0x56c   : > { %v933_v36 = vmax.f32 %v874_v35, 0.0  ;;  %1403 = vmatmul.msk.f32.gmra.mxu0 %vm194_vm1, %v773_v34 }
 0x56e   : > { %1409 = vmatmul.msk.f32.gmra.mxu1 %vm194_vm1, %v933_v36 }
 0x56f   : > { %v748_v37 = vpop.f32.mrf.mxu3 }
 0x570   : > { %v749_v38 = vadd.f32 %v748_v37, %v1785_v0 }
 0x571   : > { %v876_v39 = vpop.f32.mrf.mxu0 }
 0x572   : > { %v774_v40 = vmax.f32 %v749_v38, 0.0  ;;  %v877_v41 = vadd.f32 %v876_v39, %v1852_v11 }
 0x574   : > { %v934_v42 = vmax.f32 %v877_v41, 0.0  ;;  %1404 = vmatmul.msk.f32.gmra.mxu0 %vm194_vm1, %v774_v40 }
 0x576   : > { %1410 = vmatmul.msk.f32.gmra.mxu1 %vm194_vm1, %v934_v42 }
 0x577   : > { %v751_v43 = vpop.f32.mrf.mxu3 }
 0x578   : > { %v752_v44 = vadd.f32 %v751_v43, %v1785_v0 }
 0x579   : > { %v879_v45 = vpop.f32.mrf.mxu0 }
 0x57a   : > { %v775_v46 = vmax.f32 %v752_v44, 0.0  ;;  %v880_v47 = vadd.f32 %v879_v45, %v1852_v11 }
 0x57c   : > { %v935_v48 = vmax.f32 %v880_v47, 0.0  ;;  %1405 = vmatmul.msk.f32.gmra.mxu0 %vm194_vm1, %v775_v46 }
 0x57e   : > { %1411 = vmatmul.msk.f32.gmra.mxu1 %vm194_vm1, %v935_v48 }
 0x581   : > { %v882_v49 = vpop.f32.mrf.mxu0 }
 0x582   : > { %v883_v50 = vadd.f32 %v882_v49, %v1852_v11 }
 0x584   : > { %v936_v51 = vmax.f32 %v883_v50, 0.0 }
 0x586   : > { %1412 = vmatmul.msk.f32.gmra.mxu1 %vm194_vm1, %v936_v51 }
 0x589   : > { %v885_v52 = vpop.f32.mrf.mxu0 }
 0x58a   : > { %v886_v53 = vadd.f32 %v885_v52, %v1852_v11 }
 0x58c   : > { %v937_v54 = vmax.f32 %v886_v53, 0.0 }
 0x58e   : > { %1413 = vmatmul.msk.f32.gmra.mxu1 %vm194_vm1, %v937_v54 }
 0x591   : > { %v888_v0 = vpop.f32.mrf.mxu0 }
 0x592   : > { %v889_v55 = vadd.f32 %v888_v0, %v1852_v11 }
 0x594   : > { %v938_v56 = vmax.f32 %v889_v55, 0.0 }
 0x596   : > { %1414 = vmatmul.msk.f32.gmra.mxu1 %vm194_vm1, %v938_v56 }
 0x599   : > { %v891_v57 = vpop.f32.mrf.mxu0 }
 0x59a   : > { %v892_v58 = vadd.f32 %v891_v57, %v1852_v11 }
 0x59c   : > { %v939_v59 = vmax.f32 %v892_v58, 0.0 }
 0x59e   : > { %1415 = vmatmul.msk.f32.gmra.mxu1 %vm194_vm1, %v939_v59 }
 0x5a1   : > { %v894_v60 = vpop.f32.mrf.mxu0 }
 0x5a2   : > { %v895_v61 = vadd.f32 %v894_v60, %v1852_v11 }
 0x5a4   : > { %v940_v62 = vmax.f32 %v895_v61, 0.0 }
 0x5a6   : > { %1416 = vmatmul.msk.f32.gmra.mxu1 %vm194_vm1, %v940_v62 }
 0x5a9   : > { %v897_v63 = vpop.f32.mrf.mxu0 }
 0x5aa   : > { %v898_v1 = vadd.f32 %v897_v63, %v1852_v11 }
 0x5ac   : > { %v941_v2 = vmax.f32 %v898_v1, 0.0 }
 0x5ae   : > { %1417 = vmatmul.msk.f32.gmra.mxu1 %vm194_vm1, %v941_v2 }
 0x5b1   : > { %v900_v3 = vpop.f32.mrf.mxu0 }
 0x5b2   : > { %v901_v4 = vadd.f32 %v900_v3, %v1852_v11 }
 0x5b4   : > { %v942_v5 = vmax.f32 %v901_v4, 0.0 }
 0x5b6   : > { %1418 = vmatmul.msk.f32.gmra.mxu1 %vm194_vm1, %v942_v5 }
 0x5b9   : > { %v903_v6 = vpop.f32.mrf.mxu0 }
 0x5ba   : > { %v904_v7 = vadd.f32 %v903_v6, %v1852_v11 }
 0x5bc   : > { %v943_v8 = vmax.f32 %v904_v7, 0.0 }
 0x5be   : > { %1419 = vmatmul.msk.f32.gmra.mxu1 %vm194_vm1, %v943_v8  ;;  %v1132_v8 = vld [vmem:[%s2026_s1 + $0x108] sm:$0xff] }
 0x5bf   : > { %1160 = vmatpush.msra.mxu2 %v1132_v8 }
 0x5c1   : > { %v906_v9 = vpop.f32.mrf.mxu0 }
 0x5c2   : > { %v907_v10 = vadd.f32 %v906_v9, %v1852_v11 }
 0x5c4   : > { %v944_v13 = vmax.f32 %v907_v10, 0.0 }
 0x5c6   : > { %1420 = vmatmul.msk.f32.gmra.mxu1 %vm194_vm1, %v944_v13 }
 0x5c9   : > { %v909_v14 = vpop.f32.mrf.mxu0 }
 0x5ca   : > { %v910_v15 = vadd.f32 %v909_v14, %v1852_v11 }
 0x5cc   : > { %v945_v16 = vmax.f32 %v910_v15, 0.0 }
 0x5ce   : > { %1421 = vmatmul.msk.f32.gmra.mxu1 %vm194_vm1, %v945_v16 }
 0x5d1   : > { %v912_v18 = vpop.f32.mrf.mxu0 }
 0x5d2   : > { %v913_v19 = vadd.f32 %v912_v18, %v1852_v11 }
 0x5d3   : > { %v1040_v20 = vpop.f32.mrf.mxu1 }
 0x5d4   : > { %v946_v21 = vmax.f32 %v913_v19, 0.0  ;;  %v1041_v22 = vadd.f32 %v1040_v20, %v1899_v17 }
 0x5d6   : > { %1240 = vst.msk [vmem:[%s1594_s12] sm:$0xff] %vm194_vm1, %v1041_v22  ;;  %1422 = vmatmul.msk.f32.gmra.mxu1 %vm194_vm1, %v946_v21 }
 0x5d9   : > { %v915_v23 = vpop.f32.mrf.mxu0 }
 0x5da   : > { %v916_v24 = vadd.f32 %v915_v23, %v1852_v11 }
 0x5db   : > { %v1043_v25 = vpop.f32.mrf.mxu1 }
 0x5dc   : > { %v947_v26 = vmax.f32 %v916_v24, 0.0  ;;  %v1044_v12 = vadd.f32 %v1043_v25, %v1899_v17  ;;  %v1459_v25 = vld [vmem:[%s1519_s27] sm:$0xff] }
 0x5de   : > { %1241 = vst.msk [vmem:[%s1594_s12 + $0x8] sm:$0xff] %vm194_vm1, %v1044_v12  ;;  %1423 = vmatmul.msk.f32.gmra.mxu1 %vm194_vm1, %v947_v26 }
 0x5e1   : > { %v918_v27 = vpop.f32.mrf.mxu0 }
 0x5e2   : > { %v919_v28 = vadd.f32 %v918_v27, %v1852_v11 }
 0x5e3   : > { %v1046_v29 = vpop.f32.mrf.mxu1 }
 0x5e4   : > { %v948_v30 = vmax.f32 %v919_v28, 0.0  ;;  %v1047_v31 = vadd.f32 %v1046_v29, %v1899_v17  ;;  %v1460_v29 = vld [vmem:[%s1519_s27 + $0x8] sm:$0xff] }
 0x5e6   : > { %1242 = vst.msk [vmem:[%s1594_s12 + $0x10] sm:$0xff] %vm194_vm1, %v1047_v31  ;;  %1424 = vmatmul.msk.f32.gmra.mxu1 %vm194_vm1, %v948_v30 }
 0x5e9   : > { %v921_v32 = vpop.f32.mrf.mxu0 }
 0x5ea   : > { %v922_v33 = vadd.f32 %v921_v32, %v1852_v11 }
 0x5eb   : > { %v1049_v34 = vpop.f32.mrf.mxu1 }
 0x5ec   : > { %v949_v35 = vmax.f32 %v922_v33, 0.0  ;;  %v1050_v36 = vadd.f32 %v1049_v34, %v1899_v17  ;;  %v1172_v33 = vld [vmem:[%s2026_s1 + $0x120] sm:$0xff]  ;;  %v1171_v34 = vld [vmem:[%s2026_s1 + $0x118] sm:$0xff] }
 0x5ee   : > { %1243 = vst.msk [vmem:[%s1594_s12 + $0x18] sm:$0xff] %vm194_vm1, %v1050_v36  ;;  %1425 = vmatmul.msk.f32.gmra.mxu1 %vm194_vm1, %v949_v35  ;;  %v1209_v35 = vld [vmem:[%s2026_s1 + $0x148] sm:$0xff]  ;;  %v1170_v36 = vld [vmem:[%s2026_s1 + $0x110] sm:$0xff] }
 0x5ef   : > { %1229 = vmatpush.msra.mxu0 %v1209_v35 }
 0x5f1   : > { %v924_v37 = vpop.f32.mrf.mxu0 }
 0x5f2   : > { %v925_v38 = vadd.f32 %v924_v37, %v1852_v11 }
 0x5f3   : > { %v1052_v39 = vpop.f32.mrf.mxu1 }
 0x5f4   : > { %v950_v40 = vmax.f32 %v925_v38, 0.0  ;;  %v1053_v41 = vadd.f32 %v1052_v39, %v1899_v17  ;;  %v1461_v39 = vld [vmem:[%s2026_s1 + $0x150] sm:$0xff] }
 0x5f6   : > { %1244 = vst.msk [vmem:[%s1594_s12 + $0x20] sm:$0xff] %vm194_vm1, %v1053_v41  ;;  %1426 = vmatmul.msk.f32.gmra.mxu1 %vm194_vm1, %v950_v40  ;;  %v1133_v40 = vperm.slane %v1461_v39, 7  ;;  %v1208_v41 = vld [vmem:[%s2026_s1 + $0x140] sm:$0xff] }
 0x5f7   : > { %1230 = vmatpush.msra.mxu0 %v1208_v41 }
 0x5f9   : > { %v927_v42 = vpop.f32.mrf.mxu0 }
 0x5fa   : > { %v928_v43 = vadd.f32 %v927_v42, %v1852_v11  ;;  %v1207_v42 = vld [vmem:[%s2026_s1 + $0x138] sm:$0xff] }
 0x5fb   : > { %v1055_v44 = vpop.f32.mrf.mxu1  ;;  %1231 = vmatpush.msra.mxu0 %v1207_v42 }
 0x5fc   : > { %v951_v45 = vmax.f32 %v928_v43, 0.0  ;;  %v1056_v46 = vadd.f32 %v1055_v44, %v1899_v17 }
 0x5fe   : > { %1245 = vst.msk [vmem:[%s1594_s12 + $0x28] sm:$0xff] %vm194_vm1, %v1056_v46  ;;  %1427 = vmatmul.msk.f32.gmra.mxu1 %vm194_vm1, %v951_v45  ;;  %v1206_v45 = vld [vmem:[%s2026_s1 + $0x130] sm:$0xff] }
 0x5ff   : > { %1232 = vmatpush.msra.mxu0 %v1206_v45 }
 0x603   : > { %v1058_v47 = vpop.f32.mrf.mxu1 }
 0x604   : > { %v1059_v48 = vadd.f32 %v1058_v47, %v1899_v17 }
 0x606   : > { %1246 = vst.msk [vmem:[%s1594_s12 + $0x30] sm:$0xff] %vm194_vm1, %v1059_v48 }
 0x60b   : > { %v1061_v49 = vpop.f32.mrf.mxu1 }
 0x60c   : > { %v1062_v50 = vadd.f32 %v1061_v49, %v1899_v17 }
 0x60e   : > { %1247 = vst.msk [vmem:[%s1594_s12 + $0x38] sm:$0xff] %vm194_vm1, %v1062_v50  ;;  %v150_v50 = vld [vmem:[%s2026_s1 + $0x158] sm:$0xff] }
 0x613   : > { %v1064_v11 = vpop.f32.mrf.mxu1 }
 0x614   : > { %v1065_v51 = vadd.f32 %v1064_v11, %v1899_v17  ;;  %v1174_v11 = vperm.slane %v150_v50, 0 }
 0x616   : > { %1248 = vst.msk [vmem:[%s1594_s12 + $0x40] sm:$0xff] %vm194_vm1, %v1065_v51 }
 0x61b   : > { %v1067_v52 = vpop.f32.mrf.mxu1 }
 0x61c   : > { %v1068_v53 = vadd.f32 %v1067_v52, %v1899_v17 }
 0x61e   : > { %1249 = vst.msk [vmem:[%s1594_s12 + $0x48] sm:$0xff] %vm194_vm1, %v1068_v53 }
 0x623   : > { %v1070_v54 = vpop.f32.mrf.mxu1 }
 0x624   : > { %v1071_v0 = vadd.f32 %v1070_v54, %v1899_v17 }
 0x626   : > { %1250 = vst.msk [vmem:[%s1594_s12 + $0x50] sm:$0xff] %vm194_vm1, %v1071_v0 }
 0x62b   : > { %v1073_v55 = vpop.f32.mrf.mxu1 }
 0x62c   : > { %v1074_v56 = vadd.f32 %v1073_v55, %v1899_v17 }
 0x62e   : > { %1251 = vst.msk [vmem:[%s1594_s12 + $0x58] sm:$0xff] %vm194_vm1, %v1074_v56  ;;  %v1210_v56 = vperm.slane %v150_v50, 1 }
 0x633   : > { %v1076_v57 = vpop.f32.mrf.mxu1 }
 0x634   : > { %v1077_v58 = vadd.f32 %v1076_v57, %v1899_v17 }
 0x636   : > { %1252 = vst.msk [vmem:[%s1594_s12 + $0x60] sm:$0xff] %vm194_vm1, %v1077_v58 }
 0x63b   : > { %v1079_v59 = vpop.f32.mrf.mxu1 }
 0x63c   : > { %v1080_v60 = vadd.f32 %v1079_v59, %v1899_v17 }
 0x63e   : > { %1253 = vst.msk [vmem:[%s1594_s12 + $0x68] sm:$0xff] %vm194_vm1, %v1080_v60 }
 0x643   : > { %v1082_v61 = vpop.f32.mrf.mxu1 }
 0x644   : > { %v1083_v62 = vadd.f32 %v1082_v61, %v1899_v17 }
 0x646   : > { %1254 = vst.msk [vmem:[%s1594_s12 + $0x70] sm:$0xff] %vm194_vm1, %v1083_v62 }
 0x64b   : > { %v1085_v63 = vpop.f32.mrf.mxu1 }
 0x64c   : > { %v1086_v1 = vadd.f32 %v1085_v63, %v1899_v17 }
 0x64e   : > { %1255 = vst.msk [vmem:[%s1594_s12 + $0x78] sm:$0xff] %vm194_vm1, %v1086_v1 }
 0x653   : > { %v1088_v2 = vpop.f32.mrf.mxu1 }
 0x654   : > { %v1089_v3 = vadd.f32 %v1088_v2, %v1899_v17 }
 0x656   : > { %1256 = vst.msk [vmem:[%s1594_s12 + $0x80] sm:$0xff] %vm194_vm1, %v1089_v3 }
 0x65b   : > { %v1091_v4 = vpop.f32.mrf.mxu1 }
 0x65c   : > { %v1092_v5 = vadd.f32 %v1091_v4, %v1899_v17 }
 0x65e   : > { %1257 = vst.msk [vmem:[%s1594_s12 + $0x88] sm:$0xff] %vm194_vm1, %v1092_v5 }
 0x663   : > { %v1094_v6 = vpop.f32.mrf.mxu1 }
 0x664   : > { %v1095_v7 = vadd.f32 %v1094_v6, %v1899_v17 }
 0x666   : > { %1258 = vst.msk [vmem:[%s1594_s12 + $0x90] sm:$0xff] %vm194_vm1, %v1095_v7 }
 0x66b   : > { %v1097_v9 = vpop.f32.mrf.mxu1 }
 0x66c   : > { %v1098_v10 = vadd.f32 %v1097_v9, %v1899_v17 }
 0x66e   : > { %1259 = vst.msk [vmem:[%s1594_s12 + $0x98] sm:$0xff] %vm194_vm1, %v1098_v10 }
 0x673   : > { %v1100_v13 = vpop.f32.mrf.mxu1 }
 0x674   : > { %v1101_v14 = vadd.f32 %v1100_v13, %v1899_v17 }
 0x676   : > { %v1106_v15 = vmul.f32 0.5, %v1101_v14  ;;  %1260 = vst.msk [vmem:[%s1594_s12 + $0xa0] sm:$0xff] %vm194_vm1, %v1101_v14 }
 0x678   : > { %v1108_v16 = vmul.f32 1.442695, %v1106_v15 }
 0x67a   : > { %1455 = vpow2.f32 %v1108_v16 }
 0x67b   : > { %v1103_v18 = vpop.f32.mrf.mxu1 }
 0x67c   : > { %v1104_v19 = vadd.f32 %v1103_v18, %v1899_v17  ;;  %v1173_v17 = vld [vmem:[%s2026_s1 + $0x128] sm:$0xff] }
 0x67d   : > { %1193 = vmatpush.msra.mxu3 %v1173_v17 }
 0x67e   : > { %v1107_v20 = vmul.f32 0.5, %v1104_v19  ;;  %1261 = vst.msk [vmem:[%s1594_s12 + $0xa8] sm:$0xff] %vm194_vm1, %v1104_v19  ;;  %1126 = vrot.lane.b32.xlu1 %v1104_v19, %s1470_s28 }
 0x67f   : > { %1194 = vmatpush.msra.mxu3 %v1172_v33 }
 0x680   : > { %v1456_v21 = vpop.eup %1455  ;;  %v1110_v22 = vmul.f32 1.442695, %v1107_v20 }
 0x681   : > { %1114 = vrot.lane.b32.xlu2 %v1456_v21, %s1471_s29  ;;  %1195 = vmatpush.msra.mxu3 %v1171_v34 }
 0x682   : > { %1457 = vpow2.f32 %v1110_v22 }
 0x683   : > { %1196 = vmatpush.msra.mxu3 %v1170_v36 }
 0x688   : > { %v1458_v23 = vpop.eup %1457 }
 0x689   : > { %1116 = vrot.lane.b32.xlu0 %v1458_v23, %s1471_s29  ;;  %1124 = vrot.lane.b32.xlu2 %v1101_v14, %s1470_s28 }
 0x6db   : > { %v1115_v24 = vpop.permute.xlu2 %1114 }
 0x6dc   : > { %v1120_v26 = vmul.f32 %v1459_v25, %v1115_v24 }
 0x6e3   : > { %v1125_v12 = vpop.permute.xlu2 %1124 }
 0x6e4   : > { %v1130_v27 = vadd.f32 %v1125_v12, %v1120_v26 }
 0x6e6   : > { %1136 = vrot.lane.b32.xlu2 %v1130_v27, %s1472_s4 }
 0x6f0   : > { %v1127_v31 = vpop.permute.xlu1 %1126 }
 0x6fb   : > { %v1117_v28 = vpop.permute.xlu0 %1116 }
 0x6fc   : > { %v1121_v30 = vmul.f32 %v1460_v29, %v1117_v28 }
 0x6fe   : > { %v1131_v32 = vadd.f32 %v1127_v31, %v1121_v30 }
 0x700   : > { %1138 = vrot.lane.b32.xlu2 %v1131_v32, %s1472_s4 }
 0x740   : > { %v1137_v37 = vpop.permute.xlu2 %1136 }
 0x741   : > { %1428 = vmatmul.msk.f32.vlgmr.msra.gmra.mxu2 %vm1140_vm10, %v1137_v37 }
 0x75a   : > { %v1139_v38 = vpop.permute.xlu2 %1138 }
 0x75b   : > { %1429 = vmatmul.msk.f32.gmra.mxu2 %vm1140_vm10, %v1139_v38 }
 0x7c4   : > { %v1162_v43 = vpop.f32.mrf.mxu2 }
 0x7c5   : > { %v1163_v44 = vadd.f32 %v1162_v43, %v1133_v40 }
 0x7c7   : > { %v1168_v46 = vmax.f32 %v1163_v44, 0.0 }
 0x7c9   : > { %1430 = vmatmul.msk.f32.vlgmr.msra.gmra.mxu3 %vm194_vm1, %v1168_v46 }
 0x7de   : > { %v1165_v47 = vpop.f32.mrf.mxu2 }
 0x7df   : > { %v1166_v48 = vadd.f32 %v1165_v47, %v1133_v40 }
 0x7e1   : > { %v1169_v49 = vmax.f32 %v1166_v48, 0.0 }
 0x7e3   : > { %1431 = vmatmul.msk.f32.gmra.mxu3 %vm194_vm1, %v1169_v49 }
 0x84c   : > { %v1198_v51 = vpop.f32.mrf.mxu3 }
 0x84d   : > { %v1199_v52 = vadd.f32 %v1198_v51, %v1174_v11 }
 0x84f   : > { %v1204_v53 = vmax.f32 %v1199_v52, 0.0 }
 0x851   : > { %1432 = vmatmul.msk.f32.vlgmr.msra.gmra.mxu0 %vm194_vm1, %v1204_v53 }
 0x866   : > { %v1201_v54 = vpop.f32.mrf.mxu3 }
 0x867   : > { %v1202_v0 = vadd.f32 %v1201_v54, %v1174_v11 }
 0x869   : > { %v1205_v55 = vmax.f32 %v1202_v0, 0.0 }
 0x86b   : > { %1433 = vmatmul.msk.f32.gmra.mxu0 %vm194_vm1, %v1205_v55 }
 0x8ce   : > { %v1234_v57 = vpop.f32.mrf.mxu0 }
 0x8cf   : > { %v1235_v58 = vadd.f32 %v1234_v57, %v1210_v56 }
 0x8d1   : > { %1262 = vst.msk [vmem:[%s1594_s12 + $0xb0] sm:$0xff] %vm194_vm1, %v1235_v58 }
 0x8e8   : > { %v1237_v59 = vpop.f32.mrf.mxu0 }
 0x8e9   : > { %v1238_v60 = vadd.f32 %v1237_v59, %v1210_v56 }
 0x8eb   : > { %1263 = vst.msk [vmem:[%s1594_s12 + $0xb8] sm:$0xff] %vm194_vm1, %v1238_v60 }
 0x8ec PF: > { %s12_s9 = sadd.s32 1, %s1468_s9  }
 0x8ed   : > { %p9_p5 = scmp.ge.s32.totalorder %s12_s9, 4  }
 0x8ef   :  { %11 = sbr.rel (!%p9_p5) target bundleno = 1 (0x1), region = 58 }

</bundles_post_ra>
